<compile_context>
chip_gen: v7x
topology: tpu7x:2x2x1
jax: 0.10.0
libtpu: 0.0.40
codegen_flags: <defaults>
</compile_context>

<pallas_src>
import jax
import jax.numpy as jnp
import numpy as np
from jax.experimental import pallas as pl
from jax.experimental.pallas import tpu as pltpu


def _deep_picker_kernel(xwin1_ref, mask_ref,
                        w1_ref, b1_ref, w2_ref, b2_ref, w3_ref, b3_ref,
                        w4_ref, b4_ref, w5_ref, b5_ref, w6_ref, b6_ref,
                        w7_ref, b7_ref, wc_ref, bc_ref, o_ref):
    mask = mask_ref[...]                       # (1, Mp) 0/1 lane mask
    n = mask.shape[1]

    def shift(x, s):
        # y[:, p] = x[:, (p + s) % n]; the circular wrap only touches guard
        # lanes, whose outputs are discarded / re-masked.
        amt = (-s) % n
        if amt == 0:
            return x
        return pltpu.roll(x, amt, axis=1)

    def win11(x):
        # im2col stack for a kernel_size=11, padding=5 conv: (11 * C, Mp).
        # C is a multiple of 8, so the sublane concatenation is tile-aligned.
        return jnp.concatenate([shift(x, d - 5) for d in range(11)], axis=0)

    def conv(w_ref, x, b_ref, apply_mask=False):
        y = jnp.dot(w_ref[...], x, preferred_element_type=jnp.float32)
        y = jnp.maximum(y + b_ref[...], 0.0)
        # Mask only when the result feeds a lane-mixing stage (k=11 conv or
        # the maxpool): guard lanes must be exactly zero there.  Results that
        # feed only 1x1 convs can carry garbage in guard lanes harmlessly.
        return y * mask if apply_mask else y

    h = conv(w1_ref, xwin1_ref[...], b1_ref)               # (40, Mp)
    h = conv(w2_ref, h, b2_ref, apply_mask=True)           # (24, Mp) ch 20..23 == 0
    h = conv(w3_ref, win11(h), b3_ref)                     # (10, Mp)
    h = conv(w4_ref, h, b4_ref)                            # (20, Mp)
    h = conv(w5_ref, h, b5_ref, apply_mask=True)           # (16, Mp) ch 10..15 == 0
    h = conv(w6_ref, win11(h), b6_ref)                     # (30, Mp)
    h = conv(w7_ref, h, b7_ref, apply_mask=True)           # (18, Mp)

    # MaxPool1d(kernel=3, stride=1, padding=1) + ReLU.  h >= 0 and guard lanes
    # are 0, so zero padding matches PyTorch's -inf padding and the trailing
    # ReLU is a no-op.
    h = jnp.maximum(jnp.maximum(shift(h, -1), h), shift(h, 1))

    cls = jnp.dot(wc_ref[...], h, preferred_element_type=jnp.float32) + bc_ref[...]
    o_ref[...] = cls.astype(o_ref.dtype)       # (1, Mp) lane-dense output row


def deep_picker_forward(signal, params, batch_tile=8):
    """signal: (B, L, 1) float32 -> (B, L, 1) float32."""
    B, L, _ = signal.shape
    (w1, b1, w2, b2, w3, b3, w4, b4, w5, b5, w6, b6, w7, b7, wc, bc) = params

    G = 16                                   # zero guard lanes before each element
    Bt = int(min(batch_tile, B))             # batch elements packed per grid step
    nb = -(-B // Bt)
    B_pad = nb * Bt
    seg = L + G
    body = Bt * seg
    tail = (-body) % 128                     # make the row width a multiple of 128
    if tail < 8:                             # last element still needs >=5 guard lanes
        tail += 128
    Mp = body + tail

    # ---- input plumbing (XLA side): guard-banded lane-dense rows + conv1 im2col.
    sig = signal.reshape(B, L).astype(jnp.float32)
    sig = jnp.pad(sig, ((0, B_pad - B), (G, 0)))                     # (B_pad, seg)
    xrow = jnp.pad(sig.reshape(nb, body), ((0, 0), (0, tail)))       # (nb, Mp)
    xwin1 = jnp.stack([jnp.roll(xrow, 5 - d, axis=1) for d in range(11)],
                      axis=1)                                        # (nb, 11, Mp)

    # ---- 0/1 mask of real (non-guard) lanes; identical for every grid step.
    lane = np.arange(Mp)
    mask = jnp.asarray(((lane < body) & (lane % seg >= G)).astype(np.float32)
                       ).reshape(1, Mp)

    # ---- weights: PyTorch (Cout, Cin, K) -> (Cout, K*Cin) / (Cout, Cin) matrices.
    def pad0(a, n):                           # zero-pad dim 0 up to n rows
        return jnp.pad(a, ((0, n - a.shape[0]),) + ((0, 0),) * (a.ndim - 1))

    col = lambda b: b.reshape(-1, 1)
    W1 = w1[:, 0, :]                                                  # (40, 11)
    W2 = pad0(w2[:, :, 0], 24)                                        # (24, 40)
    W3 = jnp.transpose(jnp.pad(w3, ((0, 0), (0, 4), (0, 0))),
                       (0, 2, 1)).reshape(10, 11 * 24)                # (10, 264)
    W4 = w4[:, :, 0]                                                  # (20, 10)
    W5 = pad0(w5[:, :, 0], 16)                                        # (16, 20)
    W6 = jnp.transpose(jnp.pad(w6, ((0, 0), (0, 6), (0, 0))),
                       (0, 2, 1)).reshape(30, 11 * 16)                # (30, 176)
    W7 = w7[:, :, 0]                                                  # (18, 30)
    Wc = wc.reshape(1, 18)

    weight_args = [mask,
                   W1, col(b1), W2, pad0(col(b2), 24), W3, col(b3),
                   W4, col(b4), W5, pad0(col(b5), 16), W6, col(b6),
                   W7, col(b7), Wc, bc.reshape(1, 1)]

    in_specs = [pl.BlockSpec((None, 11, Mp), lambda i: (i, 0, 0))]
    in_specs += [pl.BlockSpec(a.shape, lambda i: (0, 0)) for a in weight_args]

    out = pl.pallas_call(
        _deep_picker_kernel,
        out_shape=jax.ShapeDtypeStruct((nb, 1, Mp), jnp.float32),
        grid=(nb,),
        in_specs=in_specs,
        out_specs=pl.BlockSpec((None, 1, Mp), lambda i: (i, 0, 0)),
        compiler_params=pltpu.CompilerParams(
            dimension_semantics=("parallel",)),
    )(xwin1, *weight_args)

    out = out.reshape(nb, Mp)[:, :body].reshape(B_pad, seg)[:, G:]
    return out[:B].reshape(B, L, 1)


def ref_forward(signal, params):
    """Pure-JAX reference matching the PyTorch forward."""
    (w1, b1, w2, b2, w3, b3, w4, b4, w5, b5, w6, b6, w7, b7, wc, bc) = params
    x = jnp.transpose(signal, (0, 2, 1))  # (B, 1, L)  == signal.transpose(1, 2)

    def conv(x, w, b, pad):
        y = jax.lax.conv_general_dilated(
            x, w, window_strides=(1,), padding=[(pad, pad)],
            dimension_numbers=("NCH", "OIH", "NCH"),
            precision=jax.lax.Precision.HIGHEST)
        return y + b[None, :, None]

    relu = jax.nn.relu
    h = relu(conv(x, w1, b1, 5))
    h = relu(conv(h, w2, b2, 0))
    h = relu(conv(h, w3, b3, 5))
    h = relu(conv(h, w4, b4, 0))
    h = relu(conv(h, w5, b5, 0))
    h = relu(conv(h, w6, b6, 5))
    h = relu(conv(h, w7, b7, 0))
    h = jax.lax.reduce_window(h, -jnp.inf, jax.lax.max,
                              window_dimensions=(1, 1, 3),
                              window_strides=(1, 1, 1),
                              padding=((0, 0), (0, 0), (1, 1)))
    h = relu(h)
    h = jnp.transpose(h, (0, 2, 1))       # (B, L, 18)
    return h @ wc.T + bc                  # (B, L, 1)


def init_params(key):
    # Deterministic synthetic parameters (PyTorch Conv1d weight layout:
    # (Cout, Cin, K); Linear weight layout: (out, in)).
    specs = [
        (40, 1, 11), (40,),
        (20, 40, 1), (20,),
        (10, 20, 11), (10,),
        (20, 10, 1), (20,),
        (10, 20, 1), (10,),
        (30, 10, 11), (30,),
        (18, 30, 1), (18,),
        (1, 18), (1,),
    ]
    keys = jax.random.split(key, len(specs))
    params = []
    for k, s in zip(keys, specs):
        if len(s) >= 2:
            scale = 1.0 / float(np.sqrt(np.prod(s[1:])))
        else:
            scale = 0.05
        params.append(scale * jax.random.normal(k, s, dtype=jnp.float32))
    return tuple(params)


if __name__ == "__main__":
    key = jax.random.PRNGKey(0)
    kp, kx = jax.random.split(key)
    params = init_params(kp)

    B, L = 2, 128
    signal = jax.random.normal(kx, (B, L, 1), dtype=jnp.float32)

    out = deep_picker_forward(signal, params)
    out = jax.block_until_ready(out)

    ref = ref_forward(signal, params)
    assert out.shape == (B, L, 1)
    np.testing.assert_allclose(np.asarray(out), np.asarray(ref),
                               rtol=1e-3, atol=1e-3)
    print("KERNEL_OK")
</pallas_src>

<mosaic_0001>
module attributes {stable_mosaic.version = 11 : i64} {
  func.func @_deep_picker_kernel(%arg0: i32, %arg1: memref<1x11x384xf32, #tpu.memory_space<vmem>>, %arg2: memref<1x384xf32, #tpu.memory_space<vmem>>, %arg3: memref<40x11xf32, #tpu.memory_space<vmem>>, %arg4: memref<40x1xf32, #tpu.memory_space<vmem>>, %arg5: memref<24x40xf32, #tpu.memory_space<vmem>>, %arg6: memref<24x1xf32, #tpu.memory_space<vmem>>, %arg7: memref<10x264xf32, #tpu.memory_space<vmem>>, %arg8: memref<10x1xf32, #tpu.memory_space<vmem>>, %arg9: memref<20x10xf32, #tpu.memory_space<vmem>>, %arg10: memref<20x1xf32, #tpu.memory_space<vmem>>, %arg11: memref<16x20xf32, #tpu.memory_space<vmem>>, %arg12: memref<16x1xf32, #tpu.memory_space<vmem>>, %arg13: memref<30x176xf32, #tpu.memory_space<vmem>>, %arg14: memref<30x1xf32, #tpu.memory_space<vmem>>, %arg15: memref<18x30xf32, #tpu.memory_space<vmem>>, %arg16: memref<18x1xf32, #tpu.memory_space<vmem>>, %arg17: memref<1x18xf32, #tpu.memory_space<vmem>>, %arg18: memref<1x1xf32, #tpu.memory_space<vmem>>, %arg19: memref<1x1x384xf32, #tpu.memory_space<vmem>>) attributes {dimension_semantics = [#tpu.dimension_semantics<parallel>], iteration_bounds = array<i64: 1>, scalar_prefetch = 0 : i64, scratch_operands = 0 : i64, tpu.core_type = #tpu.core_type<tc>, window_params = [{transform_indices = @transform_0, window_bounds = array<i64: 1, 11, 384>}, {pipeline_mode = #tpu.pipeline_mode<synchronous>, transform_indices = @transform_1, window_bounds = array<i64: 1, 384>}, {pipeline_mode = #tpu.pipeline_mode<synchronous>, transform_indices = @transform_2, window_bounds = array<i64: 40, 11>}, {pipeline_mode = #tpu.pipeline_mode<synchronous>, transform_indices = @transform_3, window_bounds = array<i64: 40, 1>}, {pipeline_mode = #tpu.pipeline_mode<synchronous>, transform_indices = @transform_4, window_bounds = array<i64: 24, 40>}, {pipeline_mode = #tpu.pipeline_mode<synchronous>, transform_indices = @transform_5, window_bounds = array<i64: 24, 1>}, {pipeline_mode = #tpu.pipeline_mode<synchronous>, transform_indices = @transform_6, window_bounds = array<i64: 10, 264>}, {pipeline_mode = #tpu.pipeline_mode<synchronous>, transform_indices = @transform_7, window_bounds = array<i64: 10, 1>}, {pipeline_mode = #tpu.pipeline_mode<synchronous>, transform_indices = @transform_8, window_bounds = array<i64: 20, 10>}, {pipeline_mode = #tpu.pipeline_mode<synchronous>, transform_indices = @transform_9, window_bounds = array<i64: 20, 1>}, {pipeline_mode = #tpu.pipeline_mode<synchronous>, transform_indices = @transform_10, window_bounds = array<i64: 16, 20>}, {pipeline_mode = #tpu.pipeline_mode<synchronous>, transform_indices = @transform_11, window_bounds = array<i64: 16, 1>}, {pipeline_mode = #tpu.pipeline_mode<synchronous>, transform_indices = @transform_12, window_bounds = array<i64: 30, 176>}, {pipeline_mode = #tpu.pipeline_mode<synchronous>, transform_indices = @transform_13, window_bounds = array<i64: 30, 1>}, {pipeline_mode = #tpu.pipeline_mode<synchronous>, transform_indices = @transform_14, window_bounds = array<i64: 18, 30>}, {pipeline_mode = #tpu.pipeline_mode<synchronous>, transform_indices = @transform_15, window_bounds = array<i64: 18, 1>}, {pipeline_mode = #tpu.pipeline_mode<synchronous>, transform_indices = @transform_16, window_bounds = array<i64: 1, 18>}, {pipeline_mode = #tpu.pipeline_mode<synchronous>, transform_indices = @transform_17, window_bounds = array<i64: 1, 1>}, {transform_indices = @transform_18, window_bounds = array<i64: 1, 1, 384>}]} {
    %c0 = arith.constant 0 : index
    %c0_0 = arith.constant 0 : index
    %0 = vector.load %arg2[%c0, %c0_0] : memref<1x384xf32, #tpu.memory_space<vmem>>, vector<1x384xf32>
    %c0_1 = arith.constant 0 : index
    %c0_2 = arith.constant 0 : index
    %c0_3 = arith.constant 0 : index
    %1 = vector.load %arg1[%c0_1, %c0_2, %c0_3] : memref<1x11x384xf32, #tpu.memory_space<vmem>>, vector<1x11x384xf32>
    %2 = vector.shape_cast %1 : vector<1x11x384xf32> to vector<11x384xf32>
    %c0_4 = arith.constant 0 : index
    %c0_5 = arith.constant 0 : index
    %3 = vector.load %arg3[%c0_4, %c0_5] : memref<40x11xf32, #tpu.memory_space<vmem>>, vector<40x11xf32>
    %cst = arith.constant dense<0.000000e+00> : vector<40x384xf32>
    %4 = tpu.matmul %3, %2, %cst {dimension_numbers = #tpu.dot_dimension_numbers<[1], [0], [0], [1], [0, 0, 1, 1], [], []>} : vector<40x11xf32>, vector<11x384xf32>, vector<40x384xf32> -> vector<40x384xf32>
    %c0_6 = arith.constant 0 : index
    %c0_7 = arith.constant 0 : index
    %5 = vector.load %arg4[%c0_6, %c0_7] : memref<40x1xf32, #tpu.memory_space<vmem>>, vector<40x1xf32>
    %6 = vector.broadcast %5 : vector<40x1xf32> to vector<40x384xf32>
    %7 = arith.addf %4, %6 : vector<40x384xf32>
    %cst_8 = arith.constant 0.000000e+00 : f32
    %8 = vector.broadcast %cst_8 : f32 to vector<40x384xf32>
    %9 = arith.maximumf %7, %8 : vector<40x384xf32>
    %c0_9 = arith.constant 0 : index
    %c0_10 = arith.constant 0 : index
    %10 = vector.load %arg5[%c0_9, %c0_10] : memref<24x40xf32, #tpu.memory_space<vmem>>, vector<24x40xf32>
    %cst_11 = arith.constant dense<0.000000e+00> : vector<24x384xf32>
    %11 = tpu.matmul %10, %9, %cst_11 {dimension_numbers = #tpu.dot_dimension_numbers<[1], [0], [0], [1], [0, 0, 1, 1], [], []>} : vector<24x40xf32>, vector<40x384xf32>, vector<24x384xf32> -> vector<24x384xf32>
    %c0_12 = arith.constant 0 : index
    %c0_13 = arith.constant 0 : index
    %12 = vector.load %arg6[%c0_12, %c0_13] : memref<24x1xf32, #tpu.memory_space<vmem>>, vector<24x1xf32>
    %13 = vector.broadcast %12 : vector<24x1xf32> to vector<24x384xf32>
    %14 = arith.addf %11, %13 : vector<24x384xf32>
    %cst_14 = arith.constant 0.000000e+00 : f32
    %15 = vector.broadcast %cst_14 : f32 to vector<24x384xf32>
    %16 = arith.maximumf %14, %15 : vector<24x384xf32>
    %17 = vector.broadcast %0 : vector<1x384xf32> to vector<24x384xf32>
    %18 = arith.mulf %16, %17 : vector<24x384xf32>
    %c5_i32 = arith.constant 5 : i32
    %19 = tpu.dynamic_rotate %18 by %c5_i32 dim 1 : vector<24x384xf32>, i32 -> vector<24x384xf32>
    %c4_i32 = arith.constant 4 : i32
    %20 = tpu.dynamic_rotate %18 by %c4_i32 dim 1 : vector<24x384xf32>, i32 -> vector<24x384xf32>
    %c3_i32 = arith.constant 3 : i32
    %21 = tpu.dynamic_rotate %18 by %c3_i32 dim 1 : vector<24x384xf32>, i32 -> vector<24x384xf32>
    %c2_i32 = arith.constant 2 : i32
    %22 = tpu.dynamic_rotate %18 by %c2_i32 dim 1 : vector<24x384xf32>, i32 -> vector<24x384xf32>
    %c1_i32 = arith.constant 1 : i32
    %23 = tpu.dynamic_rotate %18 by %c1_i32 dim 1 : vector<24x384xf32>, i32 -> vector<24x384xf32>
    %c383_i32 = arith.constant 383 : i32
    %24 = tpu.dynamic_rotate %18 by %c383_i32 dim 1 : vector<24x384xf32>, i32 -> vector<24x384xf32>
    %c382_i32 = arith.constant 382 : i32
    %25 = tpu.dynamic_rotate %18 by %c382_i32 dim 1 : vector<24x384xf32>, i32 -> vector<24x384xf32>
    %c381_i32 = arith.constant 381 : i32
    %26 = tpu.dynamic_rotate %18 by %c381_i32 dim 1 : vector<24x384xf32>, i32 -> vector<24x384xf32>
    %c380_i32 = arith.constant 380 : i32
    %27 = tpu.dynamic_rotate %18 by %c380_i32 dim 1 : vector<24x384xf32>, i32 -> vector<24x384xf32>
    %c379_i32 = arith.constant 379 : i32
    %28 = tpu.dynamic_rotate %18 by %c379_i32 dim 1 : vector<24x384xf32>, i32 -> vector<24x384xf32>
    %29 = tpu.concatenate %19, %20, %21, %22, %23, %18, %24, %25, %26, %27, %28 in 0 : vector<24x384xf32>, vector<24x384xf32>, vector<24x384xf32>, vector<24x384xf32>, vector<24x384xf32>, vector<24x384xf32>, vector<24x384xf32>, vector<24x384xf32>, vector<24x384xf32>, vector<24x384xf32>, vector<24x384xf32> -> vector<264x384xf32>
    %c0_15 = arith.constant 0 : index
    %c0_16 = arith.constant 0 : index
    %30 = vector.load %arg7[%c0_15, %c0_16] : memref<10x264xf32, #tpu.memory_space<vmem>>, vector<10x264xf32>
    %cst_17 = arith.constant dense<0.000000e+00> : vector<10x384xf32>
    %31 = tpu.matmul %30, %29, %cst_17 {dimension_numbers = #tpu.dot_dimension_numbers<[1], [0], [0], [1], [0, 0, 1, 1], [], []>} : vector<10x264xf32>, vector<264x384xf32>, vector<10x384xf32> -> vector<10x384xf32>
    %c0_18 = arith.constant 0 : index
    %c0_19 = arith.constant 0 : index
    %32 = vector.load %arg8[%c0_18, %c0_19] : memref<10x1xf32, #tpu.memory_space<vmem>>, vector<10x1xf32>
    %33 = vector.broadcast %32 : vector<10x1xf32> to vector<10x384xf32>
    %34 = arith.addf %31, %33 : vector<10x384xf32>
    %cst_20 = arith.constant 0.000000e+00 : f32
    %35 = vector.broadcast %cst_20 : f32 to vector<10x384xf32>
    %36 = arith.maximumf %34, %35 : vector<10x384xf32>
    %c0_21 = arith.constant 0 : index
    %c0_22 = arith.constant 0 : index
    %37 = vector.load %arg9[%c0_21, %c0_22] : memref<20x10xf32, #tpu.memory_space<vmem>>, vector<20x10xf32>
    %cst_23 = arith.constant dense<0.000000e+00> : vector<20x384xf32>
    %38 = tpu.matmul %37, %36, %cst_23 {dimension_numbers = #tpu.dot_dimension_numbers<[1], [0], [0], [1], [0, 0, 1, 1], [], []>} : vector<20x10xf32>, vector<10x384xf32>, vector<20x384xf32> -> vector<20x384xf32>
    %c0_24 = arith.constant 0 : index
    %c0_25 = arith.constant 0 : index
    %39 = vector.load %arg10[%c0_24, %c0_25] : memref<20x1xf32, #tpu.memory_space<vmem>>, vector<20x1xf32>
    %40 = vector.broadcast %39 : vector<20x1xf32> to vector<20x384xf32>
    %41 = arith.addf %38, %40 : vector<20x384xf32>
    %cst_26 = arith.constant 0.000000e+00 : f32
    %42 = vector.broadcast %cst_26 : f32 to vector<20x384xf32>
    %43 = arith.maximumf %41, %42 : vector<20x384xf32>
    %c0_27 = arith.constant 0 : index
    %c0_28 = arith.constant 0 : index
    %44 = vector.load %arg11[%c0_27, %c0_28] : memref<16x20xf32, #tpu.memory_space<vmem>>, vector<16x20xf32>
    %cst_29 = arith.constant dense<0.000000e+00> : vector<16x384xf32>
    %45 = tpu.matmul %44, %43, %cst_29 {dimension_numbers = #tpu.dot_dimension_numbers<[1], [0], [0], [1], [0, 0, 1, 1], [], []>} : vector<16x20xf32>, vector<20x384xf32>, vector<16x384xf32> -> vector<16x384xf32>
    %c0_30 = arith.constant 0 : index
    %c0_31 = arith.constant 0 : index
    %46 = vector.load %arg12[%c0_30, %c0_31] : memref<16x1xf32, #tpu.memory_space<vmem>>, vector<16x1xf32>
    %47 = vector.broadcast %46 : vector<16x1xf32> to vector<16x384xf32>
    %48 = arith.addf %45, %47 : vector<16x384xf32>
    %cst_32 = arith.constant 0.000000e+00 : f32
    %49 = vector.broadcast %cst_32 : f32 to vector<16x384xf32>
    %50 = arith.maximumf %48, %49 : vector<16x384xf32>
    %51 = vector.broadcast %0 : vector<1x384xf32> to vector<16x384xf32>
    %52 = arith.mulf %50, %51 : vector<16x384xf32>
    %c5_i32_33 = arith.constant 5 : i32
    %53 = tpu.dynamic_rotate %52 by %c5_i32_33 dim 1 : vector<16x384xf32>, i32 -> vector<16x384xf32>
    %c4_i32_34 = arith.constant 4 : i32
    %54 = tpu.dynamic_rotate %52 by %c4_i32_34 dim 1 : vector<16x384xf32>, i32 -> vector<16x384xf32>
    %c3_i32_35 = arith.constant 3 : i32
    %55 = tpu.dynamic_rotate %52 by %c3_i32_35 dim 1 : vector<16x384xf32>, i32 -> vector<16x384xf32>
    %c2_i32_36 = arith.constant 2 : i32
    %56 = tpu.dynamic_rotate %52 by %c2_i32_36 dim 1 : vector<16x384xf32>, i32 -> vector<16x384xf32>
    %c1_i32_37 = arith.constant 1 : i32
    %57 = tpu.dynamic_rotate %52 by %c1_i32_37 dim 1 : vector<16x384xf32>, i32 -> vector<16x384xf32>
    %c383_i32_38 = arith.constant 383 : i32
    %58 = tpu.dynamic_rotate %52 by %c383_i32_38 dim 1 : vector<16x384xf32>, i32 -> vector<16x384xf32>
    %c382_i32_39 = arith.constant 382 : i32
    %59 = tpu.dynamic_rotate %52 by %c382_i32_39 dim 1 : vector<16x384xf32>, i32 -> vector<16x384xf32>
    %c381_i32_40 = arith.constant 381 : i32
    %60 = tpu.dynamic_rotate %52 by %c381_i32_40 dim 1 : vector<16x384xf32>, i32 -> vector<16x384xf32>
    %c380_i32_41 = arith.constant 380 : i32
    %61 = tpu.dynamic_rotate %52 by %c380_i32_41 dim 1 : vector<16x384xf32>, i32 -> vector<16x384xf32>
    %c379_i32_42 = arith.constant 379 : i32
    %62 = tpu.dynamic_rotate %52 by %c379_i32_42 dim 1 : vector<16x384xf32>, i32 -> vector<16x384xf32>
    %63 = tpu.concatenate %53, %54, %55, %56, %57, %52, %58, %59, %60, %61, %62 in 0 : vector<16x384xf32>, vector<16x384xf32>, vector<16x384xf32>, vector<16x384xf32>, vector<16x384xf32>, vector<16x384xf32>, vector<16x384xf32>, vector<16x384xf32>, vector<16x384xf32>, vector<16x384xf32>, vector<16x384xf32> -> vector<176x384xf32>
    %c0_43 = arith.constant 0 : index
    %c0_44 = arith.constant 0 : index
    %64 = vector.load %arg13[%c0_43, %c0_44] : memref<30x176xf32, #tpu.memory_space<vmem>>, vector<30x176xf32>
    %cst_45 = arith.constant dense<0.000000e+00> : vector<30x384xf32>
    %65 = tpu.matmul %64, %63, %cst_45 {dimension_numbers = #tpu.dot_dimension_numbers<[1], [0], [0], [1], [0, 0, 1, 1], [], []>} : vector<30x176xf32>, vector<176x384xf32>, vector<30x384xf32> -> vector<30x384xf32>
    %c0_46 = arith.constant 0 : index
    %c0_47 = arith.constant 0 : index
    %66 = vector.load %arg14[%c0_46, %c0_47] : memref<30x1xf32, #tpu.memory_space<vmem>>, vector<30x1xf32>
    %67 = vector.broadcast %66 : vector<30x1xf32> to vector<30x384xf32>
    %68 = arith.addf %65, %67 : vector<30x384xf32>
    %cst_48 = arith.constant 0.000000e+00 : f32
    %69 = vector.broadcast %cst_48 : f32 to vector<30x384xf32>
    %70 = arith.maximumf %68, %69 : vector<30x384xf32>
    %c0_49 = arith.constant 0 : index
    %c0_50 = arith.constant 0 : index
    %71 = vector.load %arg15[%c0_49, %c0_50] : memref<18x30xf32, #tpu.memory_space<vmem>>, vector<18x30xf32>
    %cst_51 = arith.constant dense<0.000000e+00> : vector<18x384xf32>
    %72 = tpu.matmul %71, %70, %cst_51 {dimension_numbers = #tpu.dot_dimension_numbers<[1], [0], [0], [1], [0, 0, 1, 1], [], []>} : vector<18x30xf32>, vector<30x384xf32>, vector<18x384xf32> -> vector<18x384xf32>
    %c0_52 = arith.constant 0 : index
    %c0_53 = arith.constant 0 : index
    %73 = vector.load %arg16[%c0_52, %c0_53] : memref<18x1xf32, #tpu.memory_space<vmem>>, vector<18x1xf32>
    %74 = vector.broadcast %73 : vector<18x1xf32> to vector<18x384xf32>
    %75 = arith.addf %72, %74 : vector<18x384xf32>
    %cst_54 = arith.constant 0.000000e+00 : f32
    %76 = vector.broadcast %cst_54 : f32 to vector<18x384xf32>
    %77 = arith.maximumf %75, %76 : vector<18x384xf32>
    %78 = vector.broadcast %0 : vector<1x384xf32> to vector<18x384xf32>
    %79 = arith.mulf %77, %78 : vector<18x384xf32>
    %c1_i32_55 = arith.constant 1 : i32
    %80 = tpu.dynamic_rotate %79 by %c1_i32_55 dim 1 : vector<18x384xf32>, i32 -> vector<18x384xf32>
    %81 = arith.maximumf %80, %79 : vector<18x384xf32>
    %c383_i32_56 = arith.constant 383 : i32
    %82 = tpu.dynamic_rotate %79 by %c383_i32_56 dim 1 : vector<18x384xf32>, i32 -> vector<18x384xf32>
    %83 = arith.maximumf %81, %82 : vector<18x384xf32>
    %c0_57 = arith.constant 0 : index
    %c0_58 = arith.constant 0 : index
    %84 = vector.load %arg17[%c0_57, %c0_58] : memref<1x18xf32, #tpu.memory_space<vmem>>, vector<1x18xf32>
    %cst_59 = arith.constant dense<0.000000e+00> : vector<1x384xf32>
    %85 = tpu.matmul %84, %83, %cst_59 {dimension_numbers = #tpu.dot_dimension_numbers<[1], [0], [0], [1], [0, 0, 1, 1], [], []>} : vector<1x18xf32>, vector<18x384xf32>, vector<1x384xf32> -> vector<1x384xf32>
    %c0_60 = arith.constant 0 : index
    %c0_61 = arith.constant 0 : index
    %86 = vector.load %arg18[%c0_60, %c0_61] : memref<1x1xf32, #tpu.memory_space<vmem>>, vector<1x1xf32>
    %87 = vector.broadcast %86 : vector<1x1xf32> to vector<1x384xf32>
    %88 = arith.addf %85, %87 : vector<1x384xf32>
    %c0_62 = arith.constant 0 : index
    %c0_63 = arith.constant 0 : index
    %c0_64 = arith.constant 0 : index
    %89 = vector.load %arg19[%c0_62, %c0_63, %c0_64] : memref<1x1x384xf32, #tpu.memory_space<vmem>>, vector<1x1x384xf32>
    %90 = vector.shape_cast %89 : vector<1x1x384xf32> to vector<1x384xf32>
    %91 = vector.shape_cast %88 : vector<1x384xf32> to vector<1x1x384xf32>
    tpu.vector_store %arg19[%c0_62, %c0_63, %c0_64], %91 {strides = array<i32>} : memref<1x1x384xf32, #tpu.memory_space<vmem>>, vector<1x1x384xf32>,
    return
  }
  func.func @transform_0(%arg0: i32) -> (i32, i32, i32) {
    %c0_i32 = arith.constant 0 : i32
    %c0_i32_0 = arith.constant 0 : i32
    %c0_i32_1 = arith.constant 0 : i32
    return %arg0, %c0_i32, %c0_i32_0 : i32, i32, i32
  }
  func.func @transform_1(%arg0: i32) -> (i32, i32) {
    %c0_i32 = arith.constant 0 : i32
    %c0_i32_0 = arith.constant 0 : i32
    %c0_i32_1 = arith.constant 0 : i32
    return %c0_i32, %c0_i32_0 : i32, i32
  }
  func.func @transform_2(%arg0: i32) -> (i32, i32) {
    %c0_i32 = arith.constant 0 : i32
    %c0_i32_0 = arith.constant 0 : i32
    %c0_i32_1 = arith.constant 0 : i32
    return %c0_i32, %c0_i32_0 : i32, i32
  }
  func.func @transform_3(%arg0: i32) -> (i32, i32) {
    %c0_i32 = arith.constant 0 : i32
    %c0_i32_0 = arith.constant 0 : i32
    %c0_i32_1 = arith.constant 0 : i32
    return %c0_i32, %c0_i32_0 : i32, i32
  }
  func.func @transform_4(%arg0: i32) -> (i32, i32) {
    %c0_i32 = arith.constant 0 : i32
    %c0_i32_0 = arith.constant 0 : i32
    %c0_i32_1 = arith.constant 0 : i32
    return %c0_i32, %c0_i32_0 : i32, i32
  }
  func.func @transform_5(%arg0: i32) -> (i32, i32) {
    %c0_i32 = arith.constant 0 : i32
    %c0_i32_0 = arith.constant 0 : i32
    %c0_i32_1 = arith.constant 0 : i32
    return %c0_i32, %c0_i32_0 : i32, i32
  }
  func.func @transform_6(%arg0: i32) -> (i32, i32) {
    %c0_i32 = arith.constant 0 : i32
    %c0_i32_0 = arith.constant 0 : i32
    %c0_i32_1 = arith.constant 0 : i32
    return %c0_i32, %c0_i32_0 : i32, i32
  }
  func.func @transform_7(%arg0: i32) -> (i32, i32) {
    %c0_i32 = arith.constant 0 : i32
    %c0_i32_0 = arith.constant 0 : i32
    %c0_i32_1 = arith.constant 0 : i32
    return %c0_i32, %c0_i32_0 : i32, i32
  }
  func.func @transform_8(%arg0: i32) -> (i32, i32) {
    %c0_i32 = arith.constant 0 : i32
    %c0_i32_0 = arith.constant 0 : i32
    %c0_i32_1 = arith.constant 0 : i32
    return %c0_i32, %c0_i32_0 : i32, i32
  }
  func.func @transform_9(%arg0: i32) -> (i32, i32) {
    %c0_i32 = arith.constant 0 : i32
    %c0_i32_0 = arith.constant 0 : i32
    %c0_i32_1 = arith.constant 0 : i32
    return %c0_i32, %c0_i32_0 : i32, i32
  }
  func.func @transform_10(%arg0: i32) -> (i32, i32) {
    %c0_i32 = arith.constant 0 : i32
    %c0_i32_0 = arith.constant 0 : i32
    %c0_i32_1 = arith.constant 0 : i32
    return %c0_i32, %c0_i32_0 : i32, i32
  }
  func.func @transform_11(%arg0: i32) -> (i32, i32) {
    %c0_i32 = arith.constant 0 : i32
    %c0_i32_0 = arith.constant 0 : i32
    %c0_i32_1 = arith.constant 0 : i32
    return %c0_i32, %c0_i32_0 : i32, i32
  }
  func.func @transform_12(%arg0: i32) -> (i32, i32) {
    %c0_i32 = arith.constant 0 : i32
    %c0_i32_0 = arith.constant 0 : i32
    %c0_i32_1 = arith.constant 0 : i32
    return %c0_i32, %c0_i32_0 : i32, i32
  }
  func.func @transform_13(%arg0: i32) -> (i32, i32) {
    %c0_i32 = arith.constant 0 : i32
    %c0_i32_0 = arith.constant 0 : i32
    %c0_i32_1 = arith.constant 0 : i32
    return %c0_i32, %c0_i32_0 : i32, i32
  }
  func.func @transform_14(%arg0: i32) -> (i32, i32) {
    %c0_i32 = arith.constant 0 : i32
    %c0_i32_0 = arith.constant 0 : i32
    %c0_i32_1 = arith.constant 0 : i32
    return %c0_i32, %c0_i32_0 : i32, i32
  }
  func.func @transform_15(%arg0: i32) -> (i32, i32) {
    %c0_i32 = arith.constant 0 : i32
    %c0_i32_0 = arith.constant 0 : i32
    %c0_i32_1 = arith.constant 0 : i32
    return %c0_i32, %c0_i32_0 : i32, i32
  }
  func.func @transform_16(%arg0: i32) -> (i32, i32) {
    %c0_i32 = arith.constant 0 : i32
    %c0_i32_0 = arith.constant 0 : i32
    %c0_i32_1 = arith.constant 0 : i32
    return %c0_i32, %c0_i32_0 : i32, i32
  }
  func.func @transform_17(%arg0: i32) -> (i32, i32) {
    %c0_i32 = arith.constant 0 : i32
    %c0_i32_0 = arith.constant 0 : i32
    %c0_i32_1 = arith.constant 0 : i32
    return %c0_i32, %c0_i32_0 : i32, i32
  }
  func.func @transform_18(%arg0: i32) -> (i32, i32, i32) {
    %c0_i32 = arith.constant 0 : i32
    %c0_i32_0 = arith.constant 0 : i32
    %c0_i32_1 = arith.constant 0 : i32
    return %arg0, %c0_i32, %c0_i32_0 : i32, i32, i32
  }
}

</mosaic_0001>

<bundles_post_ra>
// kernel: tpu_custom_call.1
= control target key start
LH: loop header
LB: loop body
LE: loop exit
PB: predicated region body
PF: predicated region fallthrough
CT: control target
= control target key end

     0   :  { %s4700_s0 = inlined_call_operand.vmem [shape: f32[1,11,384], index: 0, kind: input, shape index: {}]   ;;  %s4701_s1 = inlined_call_operand.vmem [shape: f32[1,384], index: 1, kind: input, shape index: {}]   ;;  %s4702_s2 = inlined_call_operand.vmem [shape: f32[40,11], index: 2, kind: input, shape index: {}]   ;;  %s4703_s3 = inlined_call_operand.vmem [shape: f32[40,1], index: 3, kind: input, shape index: {}]   ;;  %s4704_s4 = inlined_call_operand.vmem [shape: f32[24,40], index: 4, kind: input, shape index: {}]   ;;  %s4705_s5 = inlined_call_operand.vmem [shape: f32[24,1], index: 5, kind: input, shape index: {}]   ;;  %s4706_s6 = inlined_call_operand.vmem [shape: f32[10,264], index: 6, kind: input, shape index: {}]   ;;  %s4707_s7 = inlined_call_operand.vmem [shape: f32[10,1], index: 7, kind: input, shape index: {}]   ;;  %s4708_s8 = inlined_call_operand.vmem [shape: f32[20,10], index: 8, kind: input, shape index: {}]   ;;  %s4709_s9 = inlined_call_operand.vmem [shape: f32[20,1], index: 9, kind: input, shape index: {}]   ;;  %s4710_s10 = inlined_call_operand.vmem [shape: f32[16,20], index: 10, kind: input, shape index: {}]   ;;  %s4711_s11 = inlined_call_operand.vmem [shape: f32[16,1], index: 11, kind: input, shape index: {}]   ;;  %s4712_s12 = inlined_call_operand.vmem [shape: f32[30,176], index: 12, kind: input, shape index: {}]   ;;  %s4713_s13 = inlined_call_operand.vmem [shape: f32[30,1], index: 13, kind: input, shape index: {}]   ;;  %s4714_s14 = inlined_call_operand.vmem [shape: f32[18,30], index: 14, kind: input, shape index: {}]   ;;  %s4715_s15 = inlined_call_operand.vmem [shape: f32[18,1], index: 15, kind: input, shape index: {}]   ;;  %s4716_s16 = inlined_call_operand.vmem [shape: f32[1,18], index: 16, kind: input, shape index: {}]   ;;  %s4717_s17 = inlined_call_operand.<no memory space> [shape: f32[1,1], index: 17, kind: input, shape index: {}]   ;;  %s4718_s18 = inlined_call_operand.hbm [shape: f32[1,1,384], index: 18, kind: output, shape index: {}]  }
   0x1   :  { %4735 = sst [smem:[#allocation6_spill]] %s4700_s0  ;;  %v23_v0 = vstv %s4717_s17 }
   0x2   :  { %4736 = sst [smem:[#allocation7_spill]] %s4701_s1  ;;  %24 = vst [vmem:[#allocation2] sm:$0x1] %v23_v0 }
   0x3   :  { %4737 = sst [smem:[#allocation8_spill]] %s4702_s2 }
   0x4   :  { %s4738_s0 = sld [smem:[#allocation6_spill]]  ;;  %vm120_vm0 = vcmask 1042432   ;;  %v4725_v3 = vmov 0.0|0.0   ;;  %vm3394_vm1 = vmmov 1   ;;  %vm3395_vm3 = vmmov 0   ;;  %s4741_s28 = sld [smem:[#allocation8_spill]] }
   0x5   :  { %2734 = vmatprep.subr.bf16.mxu1 %v4725_v3  ;;  %vm3516_vm2 = vmpackc.low %vm120_vm0, %vm3394_vm1  ;;  %v4727_v11 = vmov 0.0   ;;  %v3397_v13 = vmov 0   ;;  %vm104_vm4 = vcmask 89088   ;;  %v74_v15 = vld [vmem:[%s4703_s3] sm:$0xff]  ;;  %v76_v16 = vld [vmem:[%s4703_s3 + $0x10] sm:$0xff] }
   0x6   :  { %2641 = vmatprep.mubr.msk.f32.mxu1 %vm3395_vm3, %v4727_v11  ;;  %194 = vmatprep.mubr.f32.mxu0 %v4727_v11  ;;  %v75_v17 = vld [vmem:[%s4703_s3 + $0x8] sm:$0xff]  ;;  %v77_v18 = vld [vmem:[%s4703_s3 + $0x18] sm:$0xff] }
   0x7   :  { %2992 = vset.pattern.permute.xlu0 %v3397_v13  ;;  %2993 = vset.pattern.permute.xlu1 %v3397_v13 }
   0x8   :  { %81 = vperm.xlu0 %2992, %v74_v15   ;;  %91 = vperm.xlu1 %2993, %v76_v16  }
   0xa   :  { %v64_v1 = vld [vmem:[%s4738_s0 + $0x8] sm:$0xff]  ;;  %v67_v2 = vld [vmem:[%s4738_s0 + $0x20] sm:$0x7]  ;;  %v65_v6 = vld [vmem:[%s4738_s0 + $0x10] sm:$0xff] }
   0xb   :  { %v2728_v4 = vpack.c.bf16 %v67_v2, %v64_v1  ;;  %v68_v7 = vld [vmem:[%s4738_s0 + $0x28] sm:$0x7]  ;;  %v63_v9 = vld [vmem:[%s4738_s0] sm:$0xff]  ;;  %v66_v10 = vld [vmem:[%s4738_s0 + $0x18] sm:$0x7] }
   0xc   :  { %v2735_v8 = vpack.c.bf16 %v68_v7, %v65_v6  ;;  %v2731_v12 = vpack.c.bf16 %v66_v10, %v63_v9  ;;  %v69_v14 = vld [vmem:[%s4741_s28] sm:$0xff] }
   0xd   :  { %2730 = vmatprep.subr.msk.bf16.mxu0 %vm3516_vm2, %v2728_v4 }
   0xe   :  { %2737 = vmatpush3.bf16.msk.msra.mxu1 %vm3516_vm2, %v2735_v8  ;;  %2733 = vmatpush1.bf16.msk.msra.mxu0 %vm3516_vm2, %v2731_v12 }
   0xf   :  { %2746 = vmatprep.subr.bf16.mxu1 %v4725_v3 }
  0x11   :  { %2642 = vmatmul.mubr.msk.f32.vlgmr.msra.gmra.mrb[0].mxu1 %vm104_vm4, %v69_v14 }
  0x12   :  { %25 = vsyncpa [#allocation4], 0  ;;  %2501 = vmatmul.mubr.msk.f32.vlgmr.msra.gmra.mrb[0].mxu0 %vm104_vm4, %v69_v14  ;;  %2644 = vmatprep.mubr.msk.f32.mxu1 %vm3395_vm3, %v4727_v11  ;;  %v70_v19 = vld [vmem:[%s4741_s28 + $0x8] sm:$0xff]  ;;  %v78_v20 = vld [vmem:[%s4703_s3 + $0x20] sm:$0xff]  ;;  %vm351_vm5 = vcmask 326656   ;;  %s4742_s26 = sld [smem:[#allocation7_spill]] }
  0x13   :  { %200 = vmatprep.mubr.f32.mxu0 %v4727_v11  ;;  %86 = vperm.xlu0 %2992, %v75_v17   ;;  %v333_v21 = vld [vmem:[%s4705_s5] sm:$0xff]  ;;  %v71_v22 = vld [vmem:[%s4741_s28 + $0x10] sm:$0xff]  ;;  %v334_v23 = vld [vmem:[%s4705_s5 + $0x8] sm:$0xff]  ;;  %s3398_s27 = smov 5   ;;  %s3399_s29 = smov 4   ;;  %vm858_vm0 = vcmask 64512  }
  0x14   :  { %96 = vperm.xlu1 %2993, %v77_v18   ;;  %v335_v24 = vld [vmem:[%s4705_s5 + $0x10] sm:$0xff]  ;;  %v72_v25 = vld [vmem:[%s4741_s28 + $0x18] sm:$0xff]  ;;  %v73_v26 = vld [vmem:[%s4741_s28 + $0x20] sm:$0xff]  ;;  %s3400_s3 = smov 3   ;;  %s3401_s30 = smov 2   ;;  %vm1206_vm2 = vcmask 1041408  }
  0x15   :  { %2645 = vmatmul.mubr.msk.f32.gmra.mrb[2].mxu1 %vm104_vm4, %v70_v19  ;;  %s3402_s0 = smov 1   ;;  %s3403_s19 = smov 127  }
  0x16   :  { %2502 = vmatmul.mubr.msk.f32.gmra.mrb[2].mxu0 %vm104_vm4, %v70_v19  ;;  %2647 = vmatprep.mubr.msk.f32.mxu1 %vm3395_vm3, %v4727_v11  ;;  %s3404_s1 = smov 126   ;;  %s3405_s17 = smov 125  }
  0x17   :  { %206 = vmatprep.mubr.f32.mxu0 %v4727_v11  ;;  %101 = vperm.xlu0 %2992, %v78_v20   ;;  %s3406_s5 = smov 124   ;;  %s4721_s21 = smov 123  }
  0x18   :  { %338 = vperm.xlu1 %2993, %v333_v21  }
  0x19   :  { %2648 = vmatmul.mubr.msk.f32.gmra.mrb[4].mxu1 %vm104_vm4, %v71_v22 }
  0x1a   :  { %2503 = vmatmul.mubr.msk.f32.gmra.mrb[4].mxu0 %vm104_vm4, %v71_v22  ;;  %2650 = vmatprep.mubr.msk.f32.mxu1 %vm3395_vm3, %v4727_v11 }
  0x1b   :  { %212 = vmatprep.mubr.f32.mxu0 %v4727_v11  ;;  %343 = vperm.xlu0 %2992, %v334_v23  }
  0x1c   :  { %348 = vperm.xlu1 %2993, %v335_v24  }
  0x1d   :  { %2651 = vmatmul.mubr.msk.f32.gmra.mrb[6].mxu1 %vm104_vm4, %v72_v25 }
  0x1e   :  { %2504 = vmatmul.mubr.msk.f32.gmra.mrb[6].mxu0 %vm104_vm4, %v72_v25  ;;  %2653 = vmatprep.mubr.msk.f32.mxu1 %vm3395_vm3, %v4727_v11  ;;  %v330_v25 = vld [vmem:[%s4704_s4] sm:$0xff] }
  0x1f   :  { %218 = vmatprep.mubr.f32.mxu0 %v4727_v11 }
  0x21   :  { %2654 = vmatmul.mubr.msk.f32.gmra.mrb[8].mxu1 %vm104_vm4, %v73_v26 }
  0x22   :  { %2505 = vmatmul.mubr.msk.f32.gmra.mrb[8].mxu0 %vm104_vm4, %v73_v26  ;;  %2666 = vmatprep.mubr.msk.f32.mxu1 %vm3395_vm3, %v4727_v11  ;;  %vm2849_vm4 = vmpackc.low %vm1206_vm2, %vm3394_vm1 }
  0x23   :  { %425 = vmatprep.mubr.f32.mxu0 %v4727_v11 }
  0x87   :  { %v82_v27 = vpop.permute.xlu0 %81  ;;  %v92_v41 = vpop.permute.xlu1 %91 }
  0x92   :  { %v87_v33 = vpop.permute.xlu0 %86 }
  0x93   :  { %v97_v58 = vpop.permute.xlu1 %96 }
  0x96   :  { %v102_v7 = vpop.permute.xlu0 %101 }
  0xe4   :  { %v291_v28 = vpop.f32.mrb[0].mxu1 }
  0xe5   :  { %v196_v29 = vpop.f32.mrb[0].mxu0  ;;  %v292_v30 = vadd.f32 %v291_v28, %v82_v27  ;;  %v2643_v31 = vpop.f32.mrb[1].mxu1  ;;  %v332_v28 = vld [vmem:[%s4704_s4 + $0x10] sm:$0xff] }
  0xe6   :  { %v198_v32 = vpop.f32.mrb[1].mxu0  ;;  %v197_v34 = vadd.f32 %v196_v29, %v82_v27  ;;  %v4723_v29 = vlaneseq  ;;  %v339_v31 = vpop.permute.xlu1 %338 }
  0xe7   :  { %v199_v36 = vadd.f32 %v198_v32, %v82_v27  ;;  %v317_v37 = vmax.f32 %v292_v30, 0.0  ;;  %v331_v27 = vld [vmem:[%s4704_s4 + $0x8] sm:$0xff] }
  0xe8   :  { %v296_v35 = vpop.f32.mrb[2].mxu1  ;;  %v315_v46 = vmax.f32 %v197_v34, 0.0  ;;  %v3630_v30 = vshrl.u32 %v4723_v29, 7 }
  0xe9   :  { %v297_v38 = vadd.f32 %v296_v35, %v87_v33  ;;  %v202_v39 = vpop.f32.mrb[2].mxu0  ;;  %v2646_v40 = vpop.f32.mrb[3].mxu1  ;;  %v316_v49 = vmax.f32 %v199_v36, 0.0  ;;  %v62_v36 = vld [vmem:[%s4742_s26] sm:$0x7] }
  0xea   :  { %v203_v42 = vadd.f32 %v202_v39, %v87_v33  ;;  %v204_v43 = vpop.f32.mrb[3].mxu0  ;;  %v544_v34 = vsub.s32 2, %v3630_v30  ;;  %v4724_v40 = vsub.s32 0, %v3630_v30 }
  0xeb   :  { %v320_v44 = vmax.f32 %v297_v38, 0.0  ;;  %v205_v45 = vadd.f32 %v204_v43, %v87_v33 }
  0xec   :  { %v318_v47 = vmax.f32 %v203_v42, 0.0  ;;  %v301_v48 = vpop.f32.mrb[4].mxu1  ;;  %v540_v42 = vsub.s32 1, %v3630_v30 }
  0xed   :  { %v2747_v50 = vpack.c.bf16 %v320_v44, %v317_v37  ;;  %v319_v51 = vmax.f32 %v205_v45, 0.0  ;;  %v208_v52 = vpop.f32.mrb[4].mxu0  ;;  %v2649_v53 = vpop.f32.mrb[5].mxu1  ;;  %v302_v57 = vadd.f32 %v301_v48, %v92_v41  ;;  %v3638_v45 = vrot.slane %v62_v36, %v544_v34  ;;  %v846_v34 = vld [vmem:[%s4707_s7] sm:$0xff] }
  0xee   :  { %v2740_v54 = vpack.c.bf16 %v318_v47, %v315_v46  ;;  %v210_v55 = vpop.f32.mrb[5].mxu0  ;;  %v209_v59 = vadd.f32 %v208_v52, %v92_v41  ;;  %v344_v37 = vpop.permute.xlu0 %343  ;;  %v3642_v53 = vrot.slane %v62_v36, %v4724_v40 }
  0xef   :  { %v2738_v56 = vpack.c.bf16 %v319_v51, %v316_v49  ;;  %2748 = vmatpush3.bf16.msra.mxu1 %v2747_v50  ;;  %v211_v61 = vadd.f32 %v210_v55, %v92_v41  ;;  %v323_v4 = vmax.f32 %v302_v57, 0.0  ;;  %v349_v49 = vpop.permute.xlu1 %348  ;;  %v3644_v55 = vrot.slane %v62_v36, %v540_v42  ;;  %v1178_v36 = vld [vmem:[%s4709_s9] sm:$0xff] }
  0xf0   :  { %v306_v60 = vpop.f32.mrb[6].mxu1  ;;  %2749 = vmatprep.subr.bf16.mxu1 %v4725_v3  ;;  %v321_v8 = vmax.f32 %v209_v59, 0.0  ;;  %v3798_v42 = vand.u32 127, %v4723_v29 }
  0xf1   :  { %v307_v62 = vadd.f32 %v306_v60, %v97_v58  ;;  %v214_v63 = vpop.f32.mrb[6].mxu0  ;;  %2739 = vmatprep.subr.bf16.mxu0 %v2738_v56  ;;  %v2652_v0 = vpop.f32.mrb[7].mxu1  ;;  %v322_v12 = vmax.f32 %v211_v61, 0.0 }
  0xf2   :  { %v215_v1 = vadd.f32 %v214_v63, %v97_v58  ;;  %v216_v2 = vpop.f32.mrb[7].mxu0  ;;  %2741 = vmatpush1.bf16.msra.mxu0 %v2740_v54  ;;  %vm578_vm6 = vcmp.lt.s32.totalorder %v3798_v42, 5  ;;  %vm606_vm7 = vcmp.lt.s32.totalorder %v3798_v42, 4  ;;  %vm634_vm8 = vcmp.lt.s32.totalorder %v3798_v42, 3 }
  0xf3   :  { %v326_v5 = vmax.f32 %v307_v62, 0.0  ;;  %v217_v6 = vadd.f32 %v216_v2, %v97_v58  ;;  %vm662_vm9 = vcmp.lt.s32.totalorder %v3798_v42, 2  ;;  %vm690_vm10 = vcmp.lt.s32.totalorder %v3798_v42, 1 }
  0xf4   :  { %v324_v9 = vmax.f32 %v215_v1, 0.0  ;;  %v311_v10 = vpop.f32.mrb[8].mxu1  ;;  %vm718_vm11 = vcmp.lt.s32.totalorder %v3798_v42, 127  ;;  %vm746_vm12 = vcmp.lt.s32.totalorder %v3798_v42, 126  ;;  %vm774_vm13 = vcmp.lt.s32.totalorder %v3798_v42, 125 }
  0xf5   :  { %v2750_v13 = vpack.c.bf16 %v326_v5, %v323_v4  ;;  %v325_v14 = vmax.f32 %v217_v6, 0.0  ;;  %v312_v15 = vadd.f32 %v311_v10, %v102_v7  ;;  %v220_v16 = vpop.f32.mrb[8].mxu0  ;;  %v2655_v17 = vpop.f32.mrb[9].mxu1  ;;  %vm802_vm14 = vcmp.lt.s32.totalorder %v3798_v42, 124 }
  0xf6   :  { %v2744_v18 = vpack.c.bf16 %v324_v9, %v321_v8  ;;  %v222_v19 = vpop.f32.mrb[9].mxu0  ;;  %v221_v22 = vadd.f32 %v220_v16, %v102_v7  ;;  %vm830_vm15 = vcmp.lt.s32.totalorder %v3798_v42, 123  ;;  %v4752_v42 = vsub.s32 0, %v3630_v30 }
  0xf7   :  { %v2742_v20 = vpack.c.bf16 %v325_v14, %v322_v12  ;;  %v223_v21 = vadd.f32 %v222_v19, %v102_v7  ;;  %2751 = vmatpush3.bf16.msra.mxu1 %v2750_v13  ;;  %v329_v23 = vmax.f32 %v312_v15, 0.0 }
  0xf8   :  { %2664 = vmatprep.subr.mxu1 %v4727_v11  ;;  %v327_v26 = vmax.f32 %v221_v22, 0.0 }
  0xf9   :  { %v328_v24 = vmax.f32 %v223_v21, 0.0  ;;  %2743 = vmatprep.subr.bf16.mxu0 %v2742_v20 }
  0xfa   :  { %2745 = vmatpush1.bf16.msra.mxu0 %v2744_v18 }
  0xfb   :  { %369 = vmatprep.subr.mxu0 %v328_v24  ;;  %2665 = vmatpush3.msra.mxu1 %v329_v23 }
  0xfc   :  { %2667 = vmatmul.mubr.msk.f32.vlgmr.msra.gmra.mrb[10].mxu1 %vm351_vm5, %v330_v25 }
  0xfd   :  { %2669 = vmatprep.mubr.msk.f32.mxu1 %vm3395_vm3, %v4727_v11 }
  0xfe   :  { %370 = vmatpush1.msra.mxu0 %v327_v26 }
  0xff   :  { %2512 = vmatmul.mubr.msk.f32.vlgmr.msra.gmra.mrb[10].mxu0 %vm351_vm5, %v330_v25 }
 0x100   :  { %2670 = vmatmul.mubr.msk.f32.gmra.mrb[12].mxu1 %vm351_vm5, %v331_v27  ;;  %431 = vmatprep.mubr.f32.mxu0 %v4727_v11 }
 0x101   :  { %2672 = vmatprep.mubr.msk.f32.mxu1 %vm3395_vm3, %v4727_v11 }
 0x103   :  { %2513 = vmatmul.mubr.msk.f32.gmra.mrb[12].mxu0 %vm351_vm5, %v331_v27 }
 0x104   :  { %2673 = vmatmul.mubr.msk.f32.gmra.mrb[14].mxu1 %vm351_vm5, %v332_v28  ;;  %437 = vmatprep.mubr.f32.mxu0 %v4727_v11 }
 0x107   :  { %2514 = vmatmul.mubr.msk.f32.gmra.mrb[14].mxu0 %vm351_vm5, %v332_v28  ;;  %vm1196_vm5 = vcmask 80896  }
 0x1cf   :  { %v510_v32 = vpop.f32.mrb[10].mxu1 }
 0x1d0   :  { %v511_v33 = vadd.f32 %v510_v32, %v339_v31  ;;  %v2668_v35 = vpop.f32.mrb[11].mxu1 }
 0x1d1   :  { %v847_v35 = vld [vmem:[%s4707_s7 + $0x8] sm:$0x3] }
 0x1d2   :  { %v427_v38 = vpop.f32.mrb[10].mxu0  ;;  %v526_v44 = vmax.f32 %v511_v33, 0.0  ;;  %v841_v33 = vld [vmem:[%s4706_s6 + $0x8] sm:$0xff] }
 0x1d3   :  { %v428_v39 = vadd.f32 %v427_v38, %v339_v31  ;;  %v429_v41 = vpop.f32.mrb[11].mxu0  ;;  %v515_v43 = vpop.f32.mrb[12].mxu1  ;;  %929 = vmatprep.mubr.f32.mxu0 %v841_v33  ;;  %1083 = vmatprep.mubr.f32.mxu1 %v841_v33  ;;  %v1180_v38 = vld [vmem:[%s4709_s9 + $0x10] sm:$0xf] }
 0x1d4   :  { %v430_v46 = vadd.f32 %v429_v41, %v339_v31  ;;  %v516_v47 = vadd.f32 %v515_v43, %v344_v37  ;;  %v2671_v48 = vpop.f32.mrb[13].mxu1  ;;  %v3647_v58 = vmul.f32 %v3638_v45, %v526_v44  ;;  %v1391_v41 = vld [vmem:[%s4711_s11 + $0x8] sm:$0xff] }
 0x1d5   :  { %v524_v52 = vmax.f32 %v428_v39, 0.0  ;;  %v1390_v39 = vld [vmem:[%s4711_s11] sm:$0xff] }
 0x1d6   :  { %v529_v50 = vmax.f32 %v516_v47, 0.0  ;;  %v433_v51 = vpop.f32.mrb[12].mxu0  ;;  %v525_v54 = vmax.f32 %v430_v46, 0.0 }
 0x1d7   :  { %v435_v56 = vpop.f32.mrb[13].mxu0  ;;  %v520_v57 = vpop.f32.mrb[14].mxu1  ;;  %v3654_v4 = vmul.f32 %v3642_v53, %v524_v52  ;;  %v434_v12 = vadd.f32 %v433_v51, %v344_v37 }
 0x1d8   :  { %v554_v59 = vmul.f32 %v3638_v45, %v529_v50  ;;  %v436_v60 = vadd.f32 %v435_v56, %v344_v37  ;;  %v521_v61 = vadd.f32 %v520_v57, %v349_v49  ;;  %v2674_v62 = vpop.f32.mrb[15].mxu1  ;;  %v3657_v5 = vmul.f32 %v3644_v55, %v525_v54  ;;  %v1179_v37 = vld [vmem:[%s4709_s9 + $0x8] sm:$0xff] }
 0x1d9   :  { %v527_v14 = vmax.f32 %v434_v12, 0.0 }
 0x1da   :  { %v528_v63 = vmax.f32 %v436_v60, 0.0  ;;  %v532_v0 = vmax.f32 %v521_v61, 0.0  ;;  %v439_v1 = vpop.f32.mrb[14].mxu0  ;;  %v3651_v2 = vpack.i.bf16 %v554_v59, %v3647_v58  ;;  %v2999_v13 = vpack.i.bf16 %v3657_v5, %v3654_v4 }
 0x1db   :  { %v441_v6 = vpop.f32.mrb[15].mxu0  ;;  %v3682_v15 = vmul.f32 %v3642_v53, %v527_v14  ;;  %v440_v16 = vadd.f32 %v439_v1, %v349_v49  ;;  %v3099_v27 = vpack.i.bf16 %v3647_v58, %v3657_v5 }
 0x1dc   :  { %v3660_v7 = vmul.f32 %v3644_v55, %v528_v63  ;;  %v3663_v8 = vmul.f32 %v3638_v45, %v532_v0  ;;  %2995 = vrot.lane.b32.xlu0 %v3651_v2, %s3398_s27  ;;  %v442_v21 = vadd.f32 %v441_v6, %v349_v49 }
 0x1dd   :  { %v3014_v17 = vpack.i.bf16 %v3682_v15, %v3654_v4  ;;  %v530_v18 = vmax.f32 %v440_v16, 0.0  ;;  %v3019_v19 = vpack.i.bf16 %v3682_v15, %v3647_v58 }
 0x1de   :  { %v2816_v9 = vpack.c.bf16 %v3663_v8, %v554_v59  ;;  %v3670_v10 = vpack.i.bf16 %v3660_v7, %v3657_v5  ;;  %v531_v22 = vmax.f32 %v442_v21, 0.0  ;;  %v3114_v28 = vpack.i.bf16 %v3660_v7, %v3654_v4 }
 0x1df   :  { %v3698_v20 = vmul.f32 %v3642_v53, %v530_v18  ;;  %v3119_v31 = vpack.i.bf16 %v3682_v15, %v3663_v8 }
 0x1e0   :  { %2817 = vmatprep.subr.bf16.mxu1 %v2816_v9  ;;  %3040 = vrot.lane.b32.xlu1 %v3670_v10, %s3398_s27  ;;  %v3708_v24 = vmul.f32 %v3644_v55, %v531_v22 }
 0x1e1   :  { %3000 = vrot.lane.b32.xlu0 %v2999_v13, %s3399_s29  ;;  %v3049_v23 = vpack.i.bf16 %v3660_v7, %v3698_v20 }
 0x1e2   :  { %v3059_v25 = vpack.i.bf16 %v3708_v24, %v3698_v20  ;;  %v3074_v26 = vpack.i.bf16 %v554_v59, %v3708_v24  ;;  %v3154_v32 = vpack.i.bf16 %v3663_v8, %v3708_v24 }
 0x1e4   :  { %574 = vrot.lane.b32.xlu1 %v3663_v8, %s3398_s27 }
 0x1e5   :  { %3005 = vrot.lane.b32.xlu0 %v3651_v2, %s3400_s3 }
 0x1e8   :  { %604 = vrot.lane.b32.xlu1 %v3663_v8, %s3399_s29 }
 0x1e9   :  { %3010 = vrot.lane.b32.xlu0 %v2999_v13, %s3401_s30 }
 0x1ec   :  { %3045 = vrot.lane.b32.xlu1 %v3670_v10, %s3400_s3 }
 0x1ed   :  { %3015 = vrot.lane.b32.xlu0 %v3014_v17, %s3398_s27 }
 0x1f0   :  { %632 = vrot.lane.b32.xlu1 %v3663_v8, %s3400_s3 }
 0x1f1   :  { %3020 = vrot.lane.b32.xlu0 %v3019_v19, %s3399_s29 }
 0x1f4   :  { %660 = vrot.lane.b32.xlu1 %v3663_v8, %s3401_s30 }
 0x1f5   :  { %3025 = vrot.lane.b32.xlu0 %v3014_v17, %s3400_s3 }
 0x1f8   :  { %3050 = vrot.lane.b32.xlu1 %v3049_v23, %s3399_s29 }
 0x1f9   :  { %3030 = vrot.lane.b32.xlu0 %v3019_v19, %s3401_s30 }
 0x1fc   :  { %3055 = vrot.lane.b32.xlu1 %v3049_v23, %s3401_s30 }
 0x1fd   :  { %3035 = vrot.lane.b32.xlu0 %v3014_v17, %s3402_s0 }
 0x200   :  { %3060 = vrot.lane.b32.xlu1 %v3059_v25, %s3398_s27 }
 0x201   :  { %3070 = vrot.lane.b32.xlu0 %v3651_v2, %s3402_s0 }
 0x204   :  { %3065 = vrot.lane.b32.xlu1 %v3670_v10, %s3402_s0 }
 0x205   :  { %3075 = vrot.lane.b32.xlu0 %v3074_v26, %s3399_s29 }
 0x208   :  { %3080 = vrot.lane.b32.xlu1 %v3670_v10, %s3403_s19 }
 0x209   :  { %688 = vrot.lane.b32.xlu0 %v3663_v8, %s3402_s0 }
 0x20c   :  { %3090 = vrot.lane.b32.xlu1 %v3059_v25, %s3400_s3 }
 0x20d   :  { %3085 = vrot.lane.b32.xlu0 %v3651_v2, %s3403_s19 }
 0x210   :  { %3095 = vrot.lane.b32.xlu1 %v3014_v17, %s3403_s19 }
 0x211   :  { %3105 = vrot.lane.b32.xlu0 %v3074_v26, %s3401_s30 }
 0x214   :  { %3100 = vrot.lane.b32.xlu1 %v3099_v27, %s3404_s1 }
 0x215   :  { %704 = vrot.lane.b32.xlu0 %v3698_v20, %s3403_s19 }
 0x218   :  { %3110 = vrot.lane.b32.xlu1 %v3059_v25, %s3402_s0 }
 0x219   :  { %732 = vrot.lane.b32.xlu0 %v3698_v20, %s3404_s1 }
 0x21c   :  { %3115 = vrot.lane.b32.xlu1 %v3114_v28, %s3404_s1 }
 0x21d   :  { %3130 = vrot.lane.b32.xlu0 %v3651_v2, %s3405_s17 }
 0x220   :  { %3120 = vrot.lane.b32.xlu1 %v3119_v31, %s3404_s1 }
 0x221   :  { %760 = vrot.lane.b32.xlu0 %v3698_v20, %s3405_s17 }
 0x224   :  { %3125 = vrot.lane.b32.xlu1 %v3670_v10, %s3405_s17 }
 0x225   :  { %3155 = vrot.lane.b32.xlu0 %v3154_v32, %s3403_s19 }
 0x228   :  { %3135 = vrot.lane.b32.xlu1 %v3014_v17, %s3405_s17 }
 0x229   :  { %3160 = vrot.lane.b32.xlu0 %v3074_v26, %s3404_s1 }
 0x22c   :  { %3140 = vrot.lane.b32.xlu1 %v3099_v27, %s3406_s5 }
 0x22d   :  { %788 = vrot.lane.b32.xlu0 %v3698_v20, %s3406_s5 }
 0x230   :  { %3145 = vrot.lane.b32.xlu1 %v3114_v28, %s3406_s5 }
 0x231   :  { %3170 = vrot.lane.b32.xlu0 %v3154_v32, %s3405_s17 }
 0x234   :  { %3150 = vrot.lane.b32.xlu1 %v3119_v31, %s3406_s5 }
 0x235   :  { %3175 = vrot.lane.b32.xlu0 %v3074_v26, %s3406_s5 }
 0x238   :  { %3165 = vrot.lane.b32.xlu1 %v3670_v10, %s4721_s21 }
 0x239   :  { %3180 = vrot.lane.b32.xlu0 %v3651_v2, %s4721_s21 }
 0x23c   :  { %3185 = vrot.lane.b32.xlu1 %v3014_v17, %s4721_s21 }
 0x23d   :  { %822 = vrot.lane.b32.xlu0 %v3708_v24, %s4721_s21 }
 0x240   :  { %828 = vrot.lane.b32.xlu1 %v3663_v8, %s4721_s21 }
 0x241   :  { %816 = vrot.lane.b32.xlu0 %v3698_v20, %s4721_s21 }
 0x244   :  { %850 = vperm.xlu1 %2993, %v846_v34  }
 0x245   :  { %855 = vperm.xlu0 %2992, %v847_v35  }
 0x248   :  { %1183 = vperm.xlu1 %2993, %v1178_v36  }
 0x249   :  { %1188 = vperm.xlu0 %2992, %v1179_v37  }
 0x24c   :  { %1193 = vperm.xlu1 %2993, %v1180_v38  }
 0x24d   :  { %1394 = vperm.xlu0 %2992, %v1390_v39  }
 0x24e   :  { %v2996_v43 = vpop.permute.xlu0 %2995 }
 0x24f   :  { %v2998_v46 = vunpack.i.h.bf16 %v2996_v43  ;;  %v2997_v47 = vunpack.i.l.bf16 %v2996_v43 }
 0x250   :  { %1399 = vperm.xlu1 %2993, %v1391_v41  }
 0x252   :  { %v3041_v44 = vpop.permute.xlu1 %3040 }
 0x253   :  { %v3043_v48 = vunpack.i.h.bf16 %v3041_v44  ;;  %v3042_v49 = vunpack.i.l.bf16 %v3041_v44  ;;  %v3801_v50 = vpop.permute.xlu0 %3000 }
 0x254   :  { %v3003_v23 = vunpack.i.h.bf16 %v3801_v50  ;;  %v3002_v25 = vunpack.i.l.bf16 %v3801_v50 }
 0x255   :  { %v580_v51 = vsel %vm578_vm6, %v3043_v48, %v2998_v46  ;;  %v579_v52 = vsel %vm578_vm6, %v3042_v49, %v2997_v47 }
 0x256   :  { %v3807_v54 = vpop.permute.xlu1 %574  ;;  %v2818_v56 = vpack.c.bf16 %v580_v51, %v579_v52  ;;  %v610_v37 = vsel %vm606_vm7, %v3002_v25, %v3003_v23 }
 0x257   :  { %v3809_v57 = vpop.permute.xlu0 %3005 }
 0x258   :  { %2819 = vmatpush3.bf16.msra.mxu1 %v2818_v56  ;;  %v3008_v52 = vunpack.i.h.bf16 %v3809_v57  ;;  %v3007_v56 = vunpack.i.l.bf16 %v3809_v57 }
 0x25a   :  { %v3811_v59 = vpop.permute.xlu1 %604 }
 0x25b   :  { %v3813_v60 = vpop.permute.xlu0 %3010 }
 0x25e   :  { %v3815_v61 = vpop.permute.xlu1 %3045 }
 0x25f   :  { %v3016_v62 = vpop.permute.xlu0 %3015  ;;  %v3047_v51 = vunpack.i.l.bf16 %v3815_v61 }
 0x260   :  { %v3018_v63 = vunpack.i.h.bf16 %v3016_v62  ;;  %v3017_v0 = vunpack.i.l.bf16 %v3016_v62  ;;  %v3048_v62 = vunpack.i.h.bf16 %v3815_v61 }
 0x262   :  { %v586_v1 = vsel %vm578_vm6, %v2998_v46, %v3018_v63  ;;  %v585_v2 = vsel %vm578_vm6, %v2997_v47, %v3017_v0  ;;  %v3821_v6 = vpop.permute.xlu1 %632  ;;  %v582_v8 = vsel %vm578_vm6, %v3017_v0, %v3042_v49  ;;  %v583_v9 = vsel %vm578_vm6, %v3018_v63, %v3043_v48 }
 0x263   :  { %v3827_v10 = vpop.permute.xlu0 %3020  ;;  %v2752_v12 = vpack.c.bf16 %v583_v9, %v582_v8  ;;  %v2754_v13 = vpack.c.bf16 %v586_v1, %v585_v2  ;;  %v4729_v1 = vunpack.i.h.bf16 %v3813_v60  ;;  %v3012_v2 = vunpack.i.l.bf16 %v3813_v60 }
 0x264   :  { %v3022_v22 = vunpack.i.l.bf16 %v3827_v10  ;;  %v3023_v38 = vunpack.i.h.bf16 %v3827_v10 }
 0x265   :  { %2753 = vmatprep.subr.bf16.mxu0 %v2752_v12 }
 0x266   :  { %2755 = vmatpush1.bf16.msra.mxu0 %v2754_v13  ;;  %v3829_v14 = vpop.permute.xlu1 %660  ;;  %v613_v32 = vsel %vm606_vm7, %v3022_v22, %v3002_v25 }
 0x267   :  { %v3026_v16 = vpop.permute.xlu0 %3025 }
 0x268   :  { %v3027_v39 = vunpack.i.l.bf16 %v3026_v16  ;;  %v3028_v46 = vunpack.i.h.bf16 %v3026_v16 }
 0x26a   :  { %v3831_v17 = vpop.permute.xlu1 %3050  ;;  %v638_v12 = vsel %vm634_vm8, %v3027_v39, %v3047_v51 }
 0x26b   :  { %v3833_v18 = vpop.permute.xlu0 %3030  ;;  %v3052_v41 = vunpack.i.l.bf16 %v3831_v17  ;;  %v3053_v47 = vunpack.i.h.bf16 %v3831_v17 }
 0x26d   :  { %v615_v8 = vsel %vm606_vm7, %v3811_v59, %v3052_v41  ;;  %v611_v16 = vsel %vm606_vm7, %v3023_v38, %v3053_v47 }
 0x26e   :  { %v3835_v19 = vpop.permute.xlu1 %3055 }
 0x26f   :  { %v3837_v21 = vpop.permute.xlu0 %3035 }
 0x272   :  { %v3842_v26 = vpop.permute.xlu1 %3060 }
 0x273   :  { %v3063_v27 = vunpack.i.h.bf16 %v3842_v26  ;;  %v3062_v28 = vunpack.i.l.bf16 %v3842_v26  ;;  %v3847_v31 = vpop.permute.xlu0 %3070 }
 0x274   :  { %v3072_v10 = vunpack.i.l.bf16 %v3847_v31 }
 0x275   :  { %v587_v33 = vsel %vm578_vm6, %v3807_v54, %v3062_v28  ;;  %v584_v34 = vsel %vm578_vm6, %v3062_v28, %v3063_v27  ;;  %v639_v28 = vsel %vm634_vm8, %v3028_v46, %v3048_v62  ;;  %v581_v50 = vsel %vm578_vm6, %v3063_v27, %v3807_v54 }
 0x276   :  { %v2758_v35 = vpack.c.bf16 %v613_v32, %v587_v33  ;;  %v3860_v36 = vpop.permute.xlu1 %3065  ;;  %v2756_v44 = vpack.c.bf16 %v610_v37, %v584_v34  ;;  %v641_v32 = vsel %vm634_vm8, %v3007_v56, %v3027_v39  ;;  %v642_v33 = vsel %vm634_vm8, %v3008_v52, %v3028_v46 }
 0x277   :  { %v3868_v43 = vpop.permute.xlu0 %3075  ;;  %v4730_v34 = vunpack.i.l.bf16 %v3833_v18  ;;  %v2766_v39 = vpack.c.bf16 %v642_v33, %v641_v32  ;;  %v666_v46 = vsel %vm662_vm9, %v3012_v2, %v4729_v1  ;;  %v4734_v32 = vunpack.i.l.bf16 %v3860_v36 }
 0x278   :  { %v3078_v48 = vunpack.i.h.bf16 %v3868_v43  ;;  %v4733_v49 = vunpack.i.l.bf16 %v3868_v43  ;;  %2757 = vmatprep.subr.bf16.mxu0 %v2756_v44  ;;  %v4743_v57 = vunpack.i.l.bf16 %v3868_v43 }
 0x279   :  { %2759 = vmatpush1.bf16.msra.mxu0 %v2758_v35 }
 0x27a   :  { %v614_v63 = vsel %vm606_vm7, %v3078_v48, %v3023_v38  ;;  %v3883_v0 = vpop.permute.xlu1 %3080  ;;  %v612_v25 = vsel %vm606_vm7, %v3052_v41, %v4733_v49  ;;  %v609_v61 = vsel %vm606_vm7, %v4743_v57, %v3811_v59 }
 0x27b   :  { %v3890_v9 = vpop.permute.xlu0 %688  ;;  %v2762_v13 = vpack.c.bf16 %v615_v8, %v614_v63  ;;  %v2760_v35 = vpack.c.bf16 %v612_v25, %v611_v16  ;;  %v2764_v63 = vpack.c.bf16 %v639_v28, %v638_v12  ;;  %v3033_v8 = vunpack.i.h.bf16 %v3833_v18 }
 0x27c   :  { %v669_v16 = vsel %vm662_vm9, %v4730_v34, %v3012_v2  ;;  %v3058_v25 = vunpack.i.h.bf16 %v3835_v19  ;;  %v3057_v28 = vunpack.i.l.bf16 %v3835_v19 }
 0x27d   :  { %2761 = vmatprep.subr.bf16.mxu0 %v2760_v35 }
 0x27e   :  { %v3917_v37 = vpop.permute.xlu1 %3090  ;;  %2763 = vmatpush1.bf16.msra.mxu0 %v2762_v13  ;;  %v667_v54 = vsel %vm662_vm9, %v3033_v8, %v3058_v25 }
 0x27f   :  { %v4732_v38 = vunpack.i.h.bf16 %v3917_v37  ;;  %v3092_v41 = vunpack.i.l.bf16 %v3917_v37  ;;  %v3921_v44 = vpop.permute.xlu0 %3085  ;;  %2765 = vmatprep.subr.bf16.mxu0 %v2764_v63 }
 0x280   :  { %v3088_v2 = vunpack.i.h.bf16 %v3921_v44  ;;  %v3087_v29 = vunpack.i.l.bf16 %v3921_v44  ;;  %v607_v44 = vsel %vm606_vm7, %v3003_v23, %v3022_v22 }
 0x281   :  { %v643_v12 = vsel %vm634_vm8, %v3821_v6, %v3092_v41  ;;  %v640_v13 = vsel %vm634_vm8, %v3092_v41, %v4732_v38  ;;  %v3068_v41 = vunpack.i.h.bf16 %v3860_v36  ;;  %v2822_v49 = vpack.c.bf16 %v607_v44, %v581_v50 }
 0x282   :  { %v3944_v33 = vpop.permute.xlu1 %3095  ;;  %v2768_v35 = vpack.c.bf16 %v666_v46, %v640_v13  ;;  %v2770_v11 = vpack.c.bf16 %v669_v16, %v643_v12  ;;  %2767 = vmatpush1.bf16.msra.mxu0 %v2766_v39  ;;  %v3037_v46 = vunpack.i.l.bf16 %v3837_v21  ;;  %v3038_v16 = vunpack.i.h.bf16 %v3837_v21 }
 0x283   :  { %v3098_v63 = vunpack.i.h.bf16 %v3944_v33  ;;  %v3097_v40 = vunpack.i.l.bf16 %v3944_v33  ;;  %v3950_v3 = vpop.permute.xlu0 %3105  ;;  %v671_v12 = vsel %vm662_vm9, %v3829_v14, %v3057_v28  ;;  %v3073_v21 = vunpack.i.h.bf16 %v3847_v31 }
 0x284   :  { %v4731_v1 = vunpack.i.h.bf16 %v3950_v3  ;;  %v3107_v34 = vunpack.i.l.bf16 %v3950_v3  ;;  %2769 = vmatprep.subr.bf16.mxu0 %v2768_v35  ;;  %v694_v26 = vsel %vm690_vm10, %v3037_v46, %v4734_v32  ;;  %v695_v38 = vsel %vm690_vm10, %v3038_v16, %v3068_v41 }
 0x285   :  { %v725_v13 = vsel %vm718_vm11, %v3087_v29, %v3097_v40  ;;  %v726_v39 = vsel %vm718_vm11, %v3088_v2, %v3098_v63  ;;  %v697_v32 = vsel %vm690_vm10, %v3072_v10, %v3037_v46  ;;  %v2776_v50 = vpack.c.bf16 %v695_v38, %v694_v26 }
 0x286   :  { %v670_v22 = vsel %vm662_vm9, %v4731_v1, %v3033_v8  ;;  %v3977_v23 = vpop.permute.xlu1 %3100  ;;  %2771 = vmatpush1.bf16.msra.mxu0 %v2770_v11  ;;  %v668_v35 = vsel %vm662_vm9, %v3057_v28, %v3107_v34  ;;  %v2820_v1 = vpack.c.bf16 %v726_v39, %v725_v13  ;;  %v698_v28 = vsel %vm690_vm10, %v3073_v21, %v3038_v16 }
 0x287   :  { %v3983_v33 = vpop.permute.xlu0 %704  ;;  %v2774_v27 = vpack.c.bf16 %v671_v12, %v670_v22  ;;  %v2772_v8 = vpack.c.bf16 %v668_v35, %v667_v54  ;;  %v2778_v16 = vpack.c.bf16 %v698_v28, %v697_v32  ;;  %v3083_v54 = vunpack.i.h.bf16 %v3883_v0 }
 0x288   :  { %2821 = vmatprep.subr.bf16.mxu1 %v2820_v1  ;;  %v3082_v26 = vunpack.i.l.bf16 %v3883_v0  ;;  %v2784_v32 = vpack.c.bf16 %v3708_v24, %v3660_v7  ;;  %v3103_v28 = vunpack.i.h.bf16 %v3977_v23  ;;  %v2786_v24 = vpack.c.bf16 %v3698_v20, %v3682_v15 }
 0x289   :  { %2773 = vmatprep.subr.bf16.mxu0 %v2772_v8  ;;  %2823 = vmatpush3.bf16.msra.mxu1 %v2822_v49  ;;  %v720_v8 = vsel %vm718_vm11, %v3083_v54, %v3088_v2 }
 0x28a   :  { %v4005_v11 = vpop.permute.xlu1 %3110  ;;  %2775 = vmatpush1.bf16.msra.mxu0 %v2774_v27  ;;  %v722_v0 = vsel %vm718_vm11, %v3097_v40, %v3082_v26  ;;  %v4062_v40 = vsel %vm634_vm8, %v3048_v62, %v3008_v52 }
 0x28b   :  { %v3113_v13 = vunpack.i.h.bf16 %v4005_v11  ;;  %v3112_v44 = vunpack.i.l.bf16 %v4005_v11  ;;  %v4013_v39 = vpop.permute.xlu0 %732  ;;  %2777 = vmatprep.subr.bf16.mxu0 %v2776_v50 }
 0x28d   :  { %v699_v1 = vsel %vm690_vm10, %v3890_v9, %v3112_v44  ;;  %v696_v46 = vsel %vm690_vm10, %v3112_v44, %v3113_v13  ;;  %v3102_v44 = vunpack.i.l.bf16 %v3977_v23 }
 0x28e   :  { %v4022_v49 = vpop.permute.xlu1 %3115  ;;  %v2780_v22 = vpack.c.bf16 %v3657_v5, %v696_v46  ;;  %v2782_v38 = vpack.c.bf16 %v3654_v4, %v699_v1  ;;  %2779 = vmatpush1.bf16.msra.mxu0 %v2778_v16  ;;  %v719_v5 = vsel %vm718_vm11, %v3082_v26, %v3087_v29  ;;  %v723_v4 = vsel %vm718_vm11, %v3098_v63, %v3083_v54 }
 0x28f   :  { %v4025_v12 = vpop.permute.xlu0 %3130  ;;  %v3117_v7 = vunpack.i.l.bf16 %v4022_v49  ;;  %v4054_v29 = vsel %vm634_vm8, %v3047_v51, %v3007_v56  ;;  %v608_v51 = vsel %vm606_vm7, %v3053_v47, %v3078_v48  ;;  %v2790_v52 = vpack.c.bf16 %v723_v4, %v722_v0 }
 0x290   :  { %2781 = vmatprep.subr.bf16.mxu0 %v2780_v22  ;;  %v2788_v62 = vpack.c.bf16 %v720_v8, %v719_v5  ;;  %v3118_v15 = vunpack.i.h.bf16 %v4022_v49  ;;  %v747_v17 = vsel %vm746_vm12, %v3102_v44, %v3103_v28  ;;  %v2826_v4 = vpack.c.bf16 %v609_v61, %v608_v51 }
 0x291   :  { %v750_v47 = vsel %vm746_vm12, %v3117_v7, %v3102_v44  ;;  %v753_v59 = vsel %vm746_vm12, %v3103_v28, %v3117_v7  ;;  %v4744_v0 = vunpack.i.h.bf16 %v3917_v37  ;;  %v3133_v44 = vunpack.i.h.bf16 %v4025_v12 }
 0x292   :  { %v4030_v27 = vpop.permute.xlu1 %3120  ;;  %2783 = vmatpush1.bf16.msra.mxu0 %v2782_v38 }
 0x293   :  { %v4032_v35 = vpop.permute.xlu0 %760  ;;  %2785 = vmatprep.subr.bf16.mxu0 %v2784_v32  ;;  %v3123_v48 = vunpack.i.h.bf16 %v4030_v27  ;;  %v3122_v43 = vunpack.i.l.bf16 %v4030_v27  ;;  %v637_v28 = vsel %vm634_vm8, %v4744_v0, %v3821_v6 }
 0x295   :  { %v751_v7 = vsel %vm746_vm12, %v3123_v48, %v3118_v15 }
 0x296   :  { %v3126_v2 = vpop.permute.xlu1 %3125  ;;  %2787 = vmatpush1.bf16.msra.mxu0 %v2786_v24 }
 0x297   :  { %v3156_v56 = vpop.permute.xlu0 %3155  ;;  %2789 = vmatprep.subr.bf16.mxu0 %v2788_v62  ;;  %v3128_v23 = vunpack.i.h.bf16 %v3126_v2  ;;  %v3127_v49 = vunpack.i.l.bf16 %v3126_v2 }
 0x298   :  { %v3158_v20 = vunpack.i.h.bf16 %v3156_v56  ;;  %v3157_v63 = vunpack.i.l.bf16 %v3156_v56 }
 0x29a   :  { %v724_v50 = vsel %vm718_vm11, %v3983_v33, %v3157_v63  ;;  %v3136_v1 = vpop.permute.xlu1 %3135  ;;  %v721_v46 = vsel %vm718_vm11, %v3157_v63, %v3158_v20  ;;  %v727_v16 = vsel %vm718_vm11, %v3158_v20, %v3983_v33  ;;  %2791 = vmatpush1.bf16.msra.mxu0 %v2790_v52  ;;  %v3132_v33 = vunpack.i.l.bf16 %v4025_v12 }
 0x29b   :  { %v2794_v22 = vpack.c.bf16 %v750_v47, %v724_v50  ;;  %v3138_v38 = vunpack.i.h.bf16 %v3136_v1  ;;  %v3161_v54 = vpop.permute.xlu0 %3160  ;;  %v2792_v26 = vpack.c.bf16 %v747_v17, %v721_v46  ;;  %v3137_v27 = vunpack.i.l.bf16 %v3136_v1 }
 0x29c   :  { %v3163_v32 = vunpack.i.h.bf16 %v3161_v54  ;;  %v3162_v5 = vunpack.i.l.bf16 %v3161_v54  ;;  %v2824_v8 = vpack.c.bf16 %v753_v59, %v727_v16  ;;  %v755_v12 = vsel %vm746_vm12, %v3122_v43, %v4013_v39 }
 0x29d   :  { %2793 = vmatprep.subr.bf16.mxu0 %v2792_v26  ;;  %v775_v61 = vsel %vm774_vm13, %v3127_v49, %v3132_v33  ;;  %v776_v52 = vsel %vm774_vm13, %v3128_v23, %v3133_v44  ;;  %v782_v20 = vsel %vm774_vm13, %v3133_v44, %v3138_v38  ;;  %v4745_v63 = vunpack.i.l.bf16 %v3833_v18 }
 0x29e   :  { %v752_v24 = vsel %vm746_vm12, %v4013_v39, %v3162_v5  ;;  %2825 = vmatprep.subr.bf16.mxu1 %v2824_v8  ;;  %v3141_v2 = vpop.permute.xlu1 %3140  ;;  %v748_v37 = vsel %vm746_vm12, %v3118_v15, %v3163_v32  ;;  %v749_v6 = vsel %vm746_vm12, %v3162_v5, %v3122_v43  ;;  %2795 = vmatpush1.bf16.msra.mxu0 %v2794_v22  ;;  %v4746_v39 = vunpack.i.h.bf16 %v3813_v60 }
 0x29f   :  { %2827 = vmatpush3.bf16.msra.mxu1 %v2826_v4  ;;  %v789_v51 = vpop.permute.xlu0 %788  ;;  %v2796_v57 = vpack.c.bf16 %v749_v6, %v748_v37  ;;  %v2798_v56 = vpack.c.bf16 %v752_v24, %v751_v7  ;;  %v754_v62 = vsel %vm746_vm12, %v3163_v32, %v3123_v48  ;;  %v781_v15 = vsel %vm774_vm13, %v3132_v33, %v3137_v27 }
 0x2a0   :  { %v663_v17 = vsel %vm662_vm9, %v4746_v39, %v4745_v63  ;;  %v2828_v47 = vpack.c.bf16 %v755_v12, %v754_v62  ;;  %v2830_v43 = vpack.c.bf16 %v4062_v40, %v4054_v29  ;;  %v778_v48 = vsel %vm774_vm13, %v3137_v27, %v3127_v49 }
 0x2a1   :  { %2797 = vmatprep.subr.bf16.mxu0 %v2796_v57  ;;  %v779_v59 = vsel %vm774_vm13, %v3138_v38, %v3128_v23  ;;  %v3143_v50 = vunpack.i.h.bf16 %v3141_v2  ;;  %v3142_v18 = vunpack.i.l.bf16 %v3141_v2  ;;  %v2834_v60 = vpack.c.bf16 %v663_v17, %v637_v28 }
 0x2a2   :  { %v3146_v1 = vpop.permute.xlu1 %3145  ;;  %2829 = vmatprep.subr.bf16.mxu1 %v2828_v47  ;;  %v2800_v22 = vpack.c.bf16 %v776_v52, %v775_v61  ;;  %v2832_v54 = vpack.c.bf16 %v782_v20, %v781_v15  ;;  %v4747_v26 = vunpack.i.h.bf16 %v3950_v3  ;;  %v665_v40 = vsel %vm662_vm9, %v3107_v34, %v3829_v14  ;;  %2799 = vmatpush1.bf16.msra.mxu0 %v2798_v56 }
 0x2a3   :  { %v3147_v46 = vunpack.i.l.bf16 %v3146_v1  ;;  %v3171_v16 = vpop.permute.xlu0 %3170  ;;  %2831 = vmatpush3.bf16.msra.mxu1 %v2830_v43  ;;  %v2802_v38 = vpack.c.bf16 %v779_v59, %v778_v48  ;;  %v3148_v5 = vunpack.i.h.bf16 %v3146_v1  ;;  %v4748_v2 = vunpack.i.l.bf16 %v3860_v36 }
 0x2a4   :  { %v664_v29 = vsel %vm662_vm9, %v3058_v25, %v4747_v26  ;;  %v3173_v23 = vunpack.i.h.bf16 %v3171_v16  ;;  %v3172_v49 = vunpack.i.l.bf16 %v3171_v16  ;;  %2801 = vmatprep.subr.bf16.mxu0 %v2800_v22  ;;  %2833 = vmatprep.subr.bf16.mxu1 %v2832_v54  ;;  %v803_v25 = vsel %vm802_vm14, %v3142_v18, %v3143_v50 }
 0x2a5   :  { %v806_v27 = vsel %vm802_vm14, %v3147_v46, %v3142_v18  ;;  %v809_v19 = vsel %vm802_vm14, %v3143_v50, %v3147_v46  ;;  %v691_v37 = vsel %vm690_vm10, %v4748_v2, %v3072_v10  ;;  %v2838_v6 = vpack.c.bf16 %v665_v40, %v664_v29  ;;  %v840_v40 = vld [vmem:[%s4706_s6] sm:$0xff] }
 0x2a6   :  { %v780_v3 = vsel %vm774_vm13, %v4032_v35, %v3172_v49  ;;  %v3151_v14 = vpop.permute.xlu1 %3150  ;;  %v777_v34 = vsel %vm774_vm13, %v3172_v49, %v3173_v23  ;;  %v783_v32 = vsel %vm774_vm13, %v3173_v23, %v4032_v35  ;;  %2803 = vmatpush1.bf16.msra.mxu0 %v2802_v38  ;;  %v692_v62 = vsel %vm690_vm10, %v3068_v41, %v3073_v21  ;;  %v843_v38 = vld [vmem:[%s4706_s6 + $0x18] sm:$0x3] }
 0x2a7   :  { %v3153_v8 = vunpack.i.h.bf16 %v3151_v14  ;;  %v3152_v4 = vunpack.i.l.bf16 %v3151_v14  ;;  %v3176_v0 = vpop.permute.xlu0 %3175  ;;  %v2804_v28 = vpack.c.bf16 %v803_v25, %v777_v34  ;;  %v2806_v44 = vpack.c.bf16 %v806_v27, %v780_v3  ;;  %2835 = vmatpush3.bf16.msra.mxu1 %v2834_v60  ;;  %v842_v27 = vld [vmem:[%s4706_s6 + $0x10] sm:$0xff]  ;;  %v845_v3 = vld [vmem:[%s4706_s6 + $0x28] sm:$0x3] }
 0x2a8   :  { %v3178_v33 = vunpack.i.h.bf16 %v3176_v0  ;;  %v3177_v7 = vunpack.i.l.bf16 %v3176_v0  ;;  %v2836_v24 = vpack.c.bf16 %v809_v19, %v783_v32  ;;  %v2842_v48 = vpack.c.bf16 %v692_v62, %v691_v37 }
 0x2a9   :  { %v807_v35 = vsel %vm802_vm14, %v3153_v8, %v3148_v5  ;;  %2805 = vmatprep.subr.bf16.mxu0 %v2804_v28  ;;  %v811_v57 = vsel %vm802_vm14, %v3152_v4, %v789_v51  ;;  %v693_v1 = vsel %vm690_vm10, %v3113_v13, %v3890_v9  ;;  %v4749_v19 = vmov 0.0  }
 0x2aa   :  { %v808_v12 = vsel %vm802_vm14, %v789_v51, %v3177_v7  ;;  %2837 = vmatprep.subr.bf16.mxu1 %v2836_v24  ;;  %v3166_v61 = vpop.permute.xlu1 %3165  ;;  %v804_v52 = vsel %vm802_vm14, %v3148_v5, %v3178_v33  ;;  %v805_v56 = vsel %vm802_vm14, %v3177_v7, %v3152_v4  ;;  %v810_v10 = vsel %vm802_vm14, %v3178_v33, %v3153_v8 }
 0x2ab   :  { %v3168_v15 = vunpack.i.h.bf16 %v3166_v61  ;;  %v3167_v51 = vunpack.i.l.bf16 %v3166_v61  ;;  %v3181_v20 = vpop.permute.xlu0 %3180  ;;  %v2808_v63 = vpack.c.bf16 %v805_v56, %v804_v52  ;;  %v2810_v39 = vpack.c.bf16 %v808_v12, %v807_v35  ;;  %2807 = vmatpush1.bf16.msra.mxu0 %v2806_v44  ;;  %2839 = vmatpush3.bf16.msra.mxu1 %v2838_v6 }
 0x2ac   :  { %v3183_v17 = vunpack.i.h.bf16 %v3181_v20  ;;  %v3182_v47 = vunpack.i.l.bf16 %v3181_v20  ;;  %v2840_v43 = vpack.c.bf16 %v811_v57, %v810_v10  ;;  %v2846_v9 = vpack.c.bf16 %v3647_v58, %v693_v1  ;;  %v844_v58 = vld [vmem:[%s4706_s6 + $0x20] sm:$0x3] }
 0x2ad   :  { %2809 = vmatprep.subr.bf16.mxu0 %v2808_v63 }
 0x2ae   :  { %2841 = vmatprep.subr.bf16.mxu1 %v2840_v43  ;;  %v3186_v59 = vpop.permute.xlu1 %3185  ;;  %v831_v31 = vsel %vm830_vm15, %v3167_v51, %v3182_v47  ;;  %v832_v36 = vsel %vm830_vm15, %v3168_v15, %v3183_v17  ;;  %v1175_v43 = vld [vmem:[%s4708_s8] sm:$0xff] }
 0x2af   :  { %v3188_v41 = vunpack.i.h.bf16 %v3186_v59  ;;  %v3187_v21 = vunpack.i.l.bf16 %v3186_v59  ;;  %v823_v50 = vpop.permute.xlu0 %822  ;;  %v2812_v18 = vpack.c.bf16 %v832_v36, %v831_v31  ;;  %2811 = vmatpush1.bf16.msra.mxu0 %v2810_v39  ;;  %2843 = vmatpush3.bf16.msra.mxu1 %v2842_v48  ;;  %v4750_v48 = vmov 0.0|0.0   ;;  %v1176_v59 = vld [vmem:[%s4708_s8 + $0x8] sm:$0xff]  ;;  %v1177_v31 = vld [vmem:[%s4708_s8 + $0x10] sm:$0xf] }
 0x2b1   :  { %v834_v60 = vsel %vm830_vm15, %v3187_v21, %v3167_v51  ;;  %v835_v46 = vsel %vm830_vm15, %v3188_v41, %v3168_v15  ;;  %2813 = vmatprep.subr.bf16.mxu0 %v2812_v18  ;;  %v837_v16 = vsel %vm830_vm15, %v3182_v47, %v3187_v21  ;;  %v838_v22 = vsel %vm830_vm15, %v3183_v17, %v3188_v41 }
 0x2b2   :  { %v2814_v54 = vpack.c.bf16 %v835_v46, %v834_v60  ;;  %v829_v11 = vpop.permute.xlu1 %828  ;;  %v2844_v26 = vpack.c.bf16 %v838_v22, %v837_v16 }
 0x2b3   :  { %v817_v13 = vpop.permute.xlu0 %816  ;;  %v833_v29 = vsel %vm830_vm15, %v823_v50, %v829_v11 }
 0x2b4   :  { %2815 = vmatpush1.bf16.msra.mxu0 %v2814_v54  ;;  %2845 = vmatprep.subr.bf16.mxu1 %v2844_v26  ;;  %v839_v23 = vsel %vm830_vm15, %v829_v11, %v817_v13  ;;  %v836_v49 = vsel %vm830_vm15, %v817_v13, %v823_v50 }
 0x2b5   :  { %942 = vmatprep.subr.mxu0 %v833_v29  ;;  %2847 = vmatpush3.bf16.msra.mxu1 %v2846_v9 }
 0x2b6   :  { %2675 = vmatprep.subr.mxu1 %v839_v23 }
 0x2b7   :  { %930 = vmatmul.mubr.f32.vlgmr.msra.gmra.mrb[16].mxu0 %v840_v40 }
 0x2b8   :  { %943 = vmatpush1.msra.mxu0 %v836_v49  ;;  %1084 = vmatmul.mubr.f32.vlgmr.msra.gmra.mrb[16].mxu1 %v840_v40 }
 0x2b9   :  { %2676 = vmatpush3.msra.mxu1 %v839_v23  ;;  %935 = vmatprep.mubr.f32.mxu0 %v844_v58 }
 0x2ba   :  { %1088 = vmatprep.mubr.f32.mxu1 %v844_v58 }
 0x2bb   :  { %936 = vmatmul.mubr.f32.gmra.mrb[18].mxu0 %v843_v38 }
 0x2bc   :  { %1089 = vmatmul.mubr.f32.gmra.mrb[18].mxu1 %v843_v38  ;;  %1006 = vmatprep.mubr.f32.mxu0 %v4749_v19 }
 0x2bd   :  { %2677 = vmatprep.mubr.msk.f32.mxu1 %vm858_vm0, %v842_v27 }
 0x2bf   :  { %2518 = vmatmul.mubr.msk.f32.vlgmr.msra.gmra.mrb[16].mxu0 %vm858_vm0, %v842_v27 }
 0x2c0   :  { %2678 = vmatmul.mubr.msk.f32.vlgmr.msra.gmra.mrb[20].mxu1 %vm858_vm0, %v845_v3  ;;  %1012 = vmatprep.mubr.f32.mxu0 %v4749_v19 }
 0x2c1   :  { %1280 = vmatprep.mubr.f32.mxu1 %v4749_v19 }
 0x2c3   :  { %2519 = vmatmul.mubr.msk.f32.gmra.mrb[18].mxu0 %vm858_vm0, %v845_v3  ;;  %v851_v8 = vpop.permute.xlu1 %850  ;;  %vm1409_vm0 = vcmask 1043456  }
 0x2c4   :  { %v856_v0 = vpop.permute.xlu0 %855 }
 0x2c7   :  { %v1184_v21 = vpop.permute.xlu1 %1183 }
 0x2c8   :  { %v1189_v18 = vpop.permute.xlu0 %1188 }
 0x2cb   :  { %v1194_v29 = vpop.permute.xlu1 %1193 }
 0x38b   :  { %v2607_v14 = vpop.f32.mrb[16].mxu1 }
 0x38c   :  { %v2608_v34 = vpop.f32.mrb[17].mxu1 }
 0x38d   :  { %v2609_v25 = vadd.f32 %v2608_v34, %v2607_v14 }
 0x38f   :  { %v2610_v32 = vpop.f32.mrb[18].mxu1  ;;  %v1086_v24 = vadd.f32 %v2609_v25, %v851_v8 }
 0x390   :  { %v2611_v5 = vpop.f32.mrb[19].mxu1 }
 0x391   :  { %v2612_v4 = vadd.f32 %v2611_v5, %v2610_v32  ;;  %v1388_v32 = vld [vmem:[%s4710_s10] sm:$0xff] }
 0x392   :  { %v1008_v28 = vpop.f32.mrb[16].mxu0 }
 0x393   :  { %v1010_v44 = vpop.f32.mrb[17].mxu0  ;;  %v1091_v33 = vadd.f32 %v2612_v4, %v856_v0  ;;  %v2679_v7 = vpop.f32.mrb[20].mxu1  ;;  %v2967_v37 = vadd.f32 %v1008_v28, %v851_v8 }
 0x394   :  { %v1160_v2 = vpop.f32.mrb[21].mxu1  ;;  %v2968_v57 = vadd.f32 %v1010_v44, %v851_v8  ;;  %v1389_v44 = vld [vmem:[%s4710_s10 + $0x8] sm:$0xff] }
 0x395   :  { %v1166_v6 = vadd.f32 %v2679_v7, %v1091_v33  ;;  %v1161_v35 = vadd.f32 %v1160_v2, %v1086_v24  ;;  %v1169_v15 = vmax.f32 %v2967_v37, 0.0 }
 0x396   :  { %v1014_v12 = vpop.f32.mrb[18].mxu0  ;;  %v1170_v63 = vmax.f32 %v2968_v57, 0.0 }
 0x397   :  { %v1174_v61 = vmax.f32 %v1166_v6, 0.0  ;;  %v1171_v52 = vmax.f32 %v1161_v35, 0.0  ;;  %v2969_v56 = vadd.f32 %v1014_v12, %v856_v0  ;;  %v1016_v10 = vpop.f32.mrb[19].mxu0  ;;  %v1395_v6 = vpop.permute.xlu0 %1394 }
 0x398   :  { %v2970_v62 = vadd.f32 %v1016_v10, %v856_v0 }
 0x399   :  { %v2855_v51 = vpack.c.bf16 %v1174_v61, %v1171_v52  ;;  %v1172_v20 = vmax.f32 %v2969_v56, 0.0  ;;  %v1400_v52 = vpop.permute.xlu1 %1399 }
 0x39a   :  { %v1173_v39 = vmax.f32 %v2970_v62, 0.0 }
 0x39b   :  { %v2851_v17 = vpack.c.bf16 %v1172_v20, %v1169_v15 }
 0x39c   :  { %v2848_v47 = vpack.c.bf16 %v1173_v39, %v1170_v63 }
 0x39e   :  { %2850 = vmatprep.subr.msk.bf16.mxu1 %vm2849_vm4, %v2848_v47 }
 0x39f   :  { %2853 = vmatpush1.bf16.msk.msra.mxu1 %vm2849_vm4, %v2851_v17 }
 0x3a0   :  { %2854 = vmatprep.subr.bf16.mxu1 %v4750_v48 }
 0x3a2   :  { %2524 = vmatmul.mubr.msk.f32.vlgmr.msra.gmra.mrb[22].mxu1 %vm1196_vm5, %v1175_v43 }
 0x3a3   :  { %2857 = vmatpush3.bf16.msk.msra.mxu1 %vm2849_vm4, %v2855_v51  ;;  %1286 = vmatprep.mubr.f32.mxu1 %v4749_v19  ;;  %vm1402_vm4 = vcmask 162816  }
 0x3a6   :  { %2525 = vmatmul.mubr.msk.f32.gmra.mrb[24].mxu1 %vm1196_vm5, %v1176_v59 }
 0x3a7   :  { %1292 = vmatprep.mubr.f32.mxu1 %v4749_v19 }
 0x3aa   :  { %2526 = vmatmul.mubr.msk.f32.gmra.mrb[26].mxu1 %vm1196_vm5, %v1177_v31 }
 0x3ab   :  { %2684 = vmatprep.mubr.msk.f32.mxu1 %vm3395_vm3, %v4749_v19 }
 0x3ae   :  { %2685 = vmatmul.mubr.msk.f32.vlgmr.msra.gmra.mrb[28].mxu1 %vm1196_vm5, %v1175_v43 }
 0x3af   :  { %2687 = vmatprep.mubr.msk.f32.mxu1 %vm3395_vm3, %v4749_v19 }
 0x3b2   :  { %2688 = vmatmul.mubr.msk.f32.gmra.mrb[30].mxu1 %vm1196_vm5, %v1176_v59 }
 0x3b3   :  { %2690 = vmatprep.mubr.msk.f32.mxu1 %vm3395_vm3, %v4749_v19 }
 0x3b6   :  { %2691 = vmatmul.mubr.msk.f32.gmra.mrb[32].mxu1 %vm1196_vm5, %v1177_v31  ;;  %vm1795_vm5 = vcmask 392192  }
 0x3b7   :  { %1483 = vmatprep.mubr.f32.mxu1 %v4749_v19 }
 0x475   :  { %v1282_v36 = vpop.f32.mrb[22].mxu1 }
 0x476   :  { %v1284_v41 = vpop.f32.mrb[23].mxu1  ;;  %v1283_v50 = vadd.f32 %v1282_v36, %v1184_v21 }
 0x477   :  { %v1285_v1 = vadd.f32 %v1284_v41, %v1184_v21 }
 0x478   :  { %v1379_v54 = vmax.f32 %v1283_v50, 0.0 }
 0x479   :  { %v1288_v60 = vpop.f32.mrb[24].mxu1  ;;  %v1380_v26 = vmax.f32 %v1285_v1, 0.0 }
 0x47a   :  { %v1289_v46 = vadd.f32 %v1288_v60, %v1189_v18  ;;  %v1290_v16 = vpop.f32.mrb[25].mxu1 }
 0x47b   :  { %v1291_v22 = vadd.f32 %v1290_v16, %v1189_v18 }
 0x47c   :  { %v1382_v11 = vmax.f32 %v1289_v46, 0.0 }
 0x47d   :  { %v1383_v9 = vmax.f32 %v1291_v22, 0.0  ;;  %v1294_v13 = vpop.f32.mrb[26].mxu1 }
 0x47e   :  { %v2860_v40 = vpack.c.bf16 %v1382_v11, %v1379_v54  ;;  %v1296_v23 = vpop.f32.mrb[27].mxu1  ;;  %v1295_v38 = vadd.f32 %v1294_v13, %v1194_v29  ;;  %v1772_v13 = vld [vmem:[%s4713_s13 + $0x8] sm:$0xff] }
 0x47f   :  { %v2858_v58 = vpack.c.bf16 %v1383_v9, %v1380_v26  ;;  %v1297_v49 = vadd.f32 %v1296_v23, %v1194_v29  ;;  %v1764_v9 = vld [vmem:[%s4712_s12 + $0x8] sm:$0xff]  ;;  %v1773_v23 = vld [vmem:[%s4713_s13 + $0x10] sm:$0xff] }
 0x480   :  { %v1385_v34 = vmax.f32 %v1295_v38, 0.0  ;;  %2538 = vmatprep.mubr.msk.f32.mxu0 %vm1795_vm5, %v1764_v9  ;;  %v1999_v38 = vld [vmem:[%s4715_s15 + $0x10] sm:$0x3] }
 0x481   :  { %v1386_v27 = vmax.f32 %v1297_v49, 0.0  ;;  %v1365_v3 = vpop.f32.mrb[28].mxu1  ;;  %2859 = vmatprep.subr.bf16.mxu1 %v2858_v58  ;;  %v1998_v58 = vld [vmem:[%s4715_s15 + $0x8] sm:$0xff]  ;;  %v1997_v49 = vld [vmem:[%s4715_s15] sm:$0xff] }
 0x482   :  { %2861 = vmatpush1.bf16.msra.mxu1 %v2860_v40  ;;  %v2686_v14 = vpop.f32.mrb[29].mxu1  ;;  %v1366_v25 = vadd.f32 %v1365_v3, %v1184_v21  ;;  %v1774_v40 = vld [vmem:[%s4713_s13 + $0x18] sm:$0x3f] }
 0x483   :  { %2531 = vmatprep.subr.msk.mxu1 %vm1409_vm0, %v1386_v27 }
 0x484   :  { %v1381_v0 = vmax.f32 %v1366_v25, 0.0 }
 0x485   :  { %v1370_v5 = vpop.f32.mrb[30].mxu1 }
 0x486   :  { %v1371_v8 = vadd.f32 %v1370_v5, %v1189_v18  ;;  %2532 = vmatpush1.msk.msra.mxu1 %vm1409_vm0, %v1385_v34  ;;  %v2689_v4 = vpop.f32.mrb[31].mxu1 }
 0x487   :  { %2533 = vmatmul.mubr.msk.f32.vlgmr.msra.gmra.mrb[34].mxu1 %vm1402_vm4, %v1388_v32 }
 0x488   :  { %v1384_v28 = vmax.f32 %v1371_v8, 0.0  ;;  %1489 = vmatprep.mubr.f32.mxu1 %v4749_v19 }
 0x489   :  { %v1375_v33 = vpop.f32.mrb[32].mxu1 }
 0x48a   :  { %v2862_v7 = vpack.c.bf16 %v1384_v28, %v1381_v0  ;;  %v1376_v24 = vadd.f32 %v1375_v33, %v1194_v29  ;;  %v2692_v2 = vpop.f32.mrb[33].mxu1  ;;  %v1771_v29 = vld [vmem:[%s4713_s13] sm:$0xff] }
 0x48b   :  { %2534 = vmatmul.mubr.msk.f32.gmra.mrb[36].mxu1 %vm1402_vm4, %v1389_v44 }
 0x48c   :  { %v1387_v37 = vmax.f32 %v1376_v24, 0.0  ;;  %2863 = vmatprep.subr.bf16.mxu1 %v2862_v7  ;;  %2699 = vmatprep.mubr.msk.f32.mxu1 %vm1402_vm4, %v1388_v32 }
 0x48d   :  { %2865 = vmatpush3.bf16.msra.mxu1 %v2862_v7 }
 0x48e   :  { %2697 = vmatprep.subr.msk.mxu1 %vm1409_vm0, %v1387_v37 }
 0x491   :  { %2698 = vmatpush3.msk.msra.mxu1 %vm1409_vm0, %v1387_v37 }
 0x492   :  { %2700 = vmatmul.mubr.msk.f32.vlgmr.msra.gmra.mrb[38].mxu1 %vm1402_vm4, %v1389_v44  ;;  %2910 = vmatprep.subr.bf16.mxu1 %v4750_v48 }
 0x493   :  { %2542 = vmatprep.mubr.msk.f32.mxu1 %vm1795_vm5, %v1764_v9 }
 0x55a   :  { %v1485_v35 = vpop.f32.mrb[34].mxu1 }
 0x55b   :  { %v1486_v57 = vadd.f32 %v1485_v35, %v1395_v6  ;;  %v1487_v12 = vpop.f32.mrb[35].mxu1 }
 0x55c   :  { %v1488_v61 = vadd.f32 %v1487_v12, %v1395_v6 }
 0x55d   :  { %v1571_v10 = vmax.f32 %v1486_v57, 0.0 }
 0x55e   :  { %v1491_v56 = vpop.f32.mrb[36].mxu1  ;;  %v1572_v51 = vmax.f32 %v1488_v61, 0.0 }
 0x55f   :  { %v1492_v62 = vadd.f32 %v1491_v56, %v1400_v52  ;;  %v1493_v15 = vpop.f32.mrb[37].mxu1  ;;  %v4267_v17 = vmul.f32 %v1571_v10, %v3642_v53 }
 0x560   :  { %v1494_v20 = vadd.f32 %v1493_v15, %v1400_v52  ;;  %v4273_v43 = vmul.f32 %v1572_v51, %v3644_v55 }
 0x561   :  { %v1574_v63 = vmax.f32 %v1492_v62, 0.0 }
 0x562   :  { %v1575_v39 = vmax.f32 %v1494_v20, 0.0 }
 0x563   :  { %v4270_v47 = vmul.f32 %v1574_v63, %v3642_v53 }
 0x564   :  { %v4276_v59 = vmul.f32 %v1575_v39, %v3644_v55 }
 0x565   :  { %v2701_v31 = vpop.f32.mrb[38].mxu1  ;;  %v3194_v36 = vpack.i.bf16 %v4270_v47, %v4267_v17  ;;  %v2888_v54 = vpack.c.bf16 %v4270_v47, %v4267_v17 }
 0x566   :  { %v1568_v41 = vadd.f32 %v2701_v31, %v1400_v52  ;;  %v1562_v21 = vpop.f32.mrb[39].mxu1  ;;  %v3209_v50 = vpack.i.bf16 %v4276_v59, %v4273_v43  ;;  %v2886_v22 = vpack.c.bf16 %v4276_v59, %v4273_v43 }
 0x567   :  { %v1563_v18 = vadd.f32 %v1562_v21, %v1395_v6  ;;  %3195 = vrot.lane.b32.xlu1 %v3194_v36, %s3399_s29  ;;  %3190 = vrot.lane.b32.xlu0 %v3194_v36, %s3398_s27 }
 0x568   :  { %v1576_v1 = vmax.f32 %v1568_v41, 0.0 }
 0x569   :  { %v1573_v60 = vmax.f32 %v1563_v18, 0.0 }
 0x56a   :  { %v4285_v46 = vmul.f32 %v1576_v1, %v3638_v45 }
 0x56b   :  { %v4288_v16 = vmul.f32 %v1573_v60, %v3638_v45  ;;  %3205 = vrot.lane.b32.xlu1 %v3194_v36, %s3401_s30  ;;  %3200 = vrot.lane.b32.xlu0 %v3194_v36, %s3400_s3 }
 0x56d   :  { %v3229_v11 = vpack.i.bf16 %v4285_v46, %v4288_v16  ;;  %v2926_v26 = vpack.c.bf16 %v4285_v46, %v4288_v16 }
 0x56f   :  { %3210 = vrot.lane.b32.xlu1 %v3209_v50, %s3398_s27  ;;  %3215 = vrot.lane.b32.xlu0 %v3209_v50, %s3399_s29 }
 0x573   :  { %3220 = vrot.lane.b32.xlu1 %v3209_v50, %s3400_s3  ;;  %3225 = vrot.lane.b32.xlu0 %v3209_v50, %s3401_s30 }
 0x577   :  { %3240 = vrot.lane.b32.xlu1 %v3209_v50, %s3402_s0  ;;  %3230 = vrot.lane.b32.xlu0 %v3229_v11, %s3398_s27 }
 0x57b   :  { %3245 = vrot.lane.b32.xlu1 %v3229_v11, %s3399_s29  ;;  %3235 = vrot.lane.b32.xlu0 %v3194_v36, %s3402_s0  ;;  %s4751_s29 = smov 123  }
 0x57f   :  { %3250 = vrot.lane.b32.xlu1 %v3209_v50, %s3403_s19  ;;  %3255 = vrot.lane.b32.xlu0 %v3229_v11, %s3400_s3 }
 0x583   :  { %3260 = vrot.lane.b32.xlu1 %v3229_v11, %s3401_s30  ;;  %3270 = vrot.lane.b32.xlu0 %v3209_v50, %s3404_s1 }
 0x587   :  { %3265 = vrot.lane.b32.xlu1 %v3194_v36, %s3403_s19  ;;  %3275 = vrot.lane.b32.xlu0 %v3229_v11, %s3402_s0 }
 0x58b   :  { %3285 = vrot.lane.b32.xlu1 %v3209_v50, %s3405_s17  ;;  %3280 = vrot.lane.b32.xlu0 %v3194_v36, %s3404_s1 }
 0x58f   :  { %3295 = vrot.lane.b32.xlu1 %v3229_v11, %s3404_s1  ;;  %3290 = vrot.lane.b32.xlu0 %v3229_v11, %s3403_s19 }
 0x593   :  { %3300 = vrot.lane.b32.xlu1 %v3194_v36, %s3405_s17  ;;  %3305 = vrot.lane.b32.xlu0 %v3209_v50, %s3406_s5 }
 0x597   :  { %3320 = vrot.lane.b32.xlu1 %v3229_v11, %s3406_s5  ;;  %3310 = vrot.lane.b32.xlu0 %v3229_v11, %s3405_s17 }
 0x59b   :  { %3325 = vrot.lane.b32.xlu1 %v3209_v50, %s4751_s29  ;;  %3315 = vrot.lane.b32.xlu0 %v3194_v36, %s3406_s5 }
 0x59f   :  { %3335 = vrot.lane.b32.xlu1 %v3194_v36, %s4751_s29  ;;  %3330 = vrot.lane.b32.xlu0 %v3229_v11, %s4751_s29 }
 0x5a3   :  { %1782 = vperm.xlu1 %2993, %v1772_v13   ;;  %1777 = vperm.xlu0 %2992, %v1771_v29  }
 0x5a7   :  { %1792 = vperm.xlu1 %2993, %v1774_v40   ;;  %1787 = vperm.xlu0 %2992, %v1773_v23  }
 0x5ab   :  { %2007 = vperm.xlu1 %2993, %v1998_v58   ;;  %2002 = vperm.xlu0 %2992, %v1997_v49  }
 0x5af   :  { %2012 = vperm.xlu0 %2992, %v1999_v38  }
 0x5d9   :  { %v3196_v27 = vpop.permute.xlu1 %3195  ;;  %v3191_v3 = vpop.permute.xlu0 %3190 }
 0x5da   :  { %v3193_v5 = vunpack.i.h.bf16 %v3191_v3  ;;  %v3192_v8 = vunpack.i.l.bf16 %v3191_v3  ;;  %v3198_v6 = vunpack.i.h.bf16 %v3196_v27  ;;  %v3197_v35 = vunpack.i.l.bf16 %v3196_v27 }
 0x5dd   :  { %v4352_v14 = vpop.permute.xlu1 %3205  ;;  %v4354_v34 = vpop.permute.xlu0 %3200 }
 0x5de   :  { %v3203_v31 = vunpack.i.h.bf16 %v4354_v34  ;;  %v3202_v36 = vunpack.i.l.bf16 %v4354_v34  ;;  %v3208_v27 = vunpack.i.h.bf16 %v4352_v14  ;;  %v3207_v3 = vunpack.i.l.bf16 %v4352_v14 }
 0x5e1   :  { %v3211_v25 = vpop.permute.xlu1 %3210  ;;  %v3216_v32 = vpop.permute.xlu0 %3215 }
 0x5e2   :  { %v3213_v4 = vunpack.i.h.bf16 %v3211_v25  ;;  %v3212_v0 = vunpack.i.l.bf16 %v3211_v25  ;;  %v3218_v2 = vunpack.i.h.bf16 %v3216_v32  ;;  %v3217_v37 = vunpack.i.l.bf16 %v3216_v32 }
 0x5e4   :  { %v1597_v28 = vsel %vm578_vm6, %v3192_v8, %v3212_v0  ;;  %v1598_v44 = vsel %vm578_vm6, %v3193_v5, %v3213_v4  ;;  %v1615_v62 = vsel %vm606_vm7, %v3197_v35, %v3217_v37  ;;  %v1616_v15 = vsel %vm606_vm7, %v3198_v6, %v3218_v2 }
 0x5e5   :  { %v3221_v33 = vpop.permute.xlu1 %3220  ;;  %v4360_v7 = vpop.permute.xlu0 %3225  ;;  %v2866_v24 = vpack.c.bf16 %v1598_v44, %v1597_v28  ;;  %v2870_v11 = vpack.c.bf16 %v1616_v15, %v1615_v62 }
 0x5e6   :  { %v3223_v56 = vunpack.i.h.bf16 %v3221_v33  ;;  %v3222_v10 = vunpack.i.l.bf16 %v3221_v33  ;;  %v3228_v9 = vunpack.i.h.bf16 %v4360_v7  ;;  %v3227_v13 = vunpack.i.l.bf16 %v4360_v7 }
 0x5e7   :  { %2867 = vmatprep.subr.bf16.mxu0 %v2866_v24 }
 0x5e8   :  { %v1633_v29 = vsel %vm634_vm8, %v3202_v36, %v3222_v10  ;;  %v1634_v40 = vsel %vm634_vm8, %v3203_v31, %v3223_v56  ;;  %v1651_v33 = vsel %vm662_vm9, %v3207_v3, %v3227_v13  ;;  %v1652_v14 = vsel %vm662_vm9, %v3208_v27, %v3228_v9 }
 0x5e9   :  { %v4362_v57 = vpop.permute.xlu1 %3240  ;;  %v3231_v12 = vpop.permute.xlu0 %3230  ;;  %v2878_v15 = vpack.c.bf16 %v1652_v14, %v1651_v33 }
 0x5ea   :  { %v3233_v61 = vunpack.i.h.bf16 %v3231_v12  ;;  %v3232_v52 = vunpack.i.l.bf16 %v3231_v12 }
 0x5ec   :  { %v1596_v51 = vsel %vm578_vm6, %v3213_v4, %v3233_v61  ;;  %v1595_v20 = vsel %vm578_vm6, %v3212_v0, %v3232_v52  ;;  %v1599_v63 = vsel %vm578_vm6, %v3232_v52, %v3192_v8  ;;  %v1600_v39 = vsel %vm578_vm6, %v3233_v61, %v3193_v5 }
 0x5ed   :  { %v2868_v41 = vpack.c.bf16 %v1600_v39, %v1599_v63  ;;  %v2911_v21 = vpack.c.bf16 %v1596_v51, %v1595_v20  ;;  %v3246_v50 = vpop.permute.xlu1 %3245  ;;  %v4378_v18 = vpop.permute.xlu0 %3235  ;;  %v2874_v0 = vpack.c.bf16 %v1634_v40, %v1633_v29  ;;  %vm2025_vm6 = vcmask 1045504  }
 0x5ee   :  { %v3248_v1 = vunpack.i.h.bf16 %v3246_v50  ;;  %v3247_v60 = vunpack.i.l.bf16 %v3246_v50  ;;  %v3238_v28 = vunpack.i.h.bf16 %v4378_v18  ;;  %v3237_v44 = vunpack.i.l.bf16 %v4378_v18 }
 0x5ef   :  { %2869 = vmatpush1.bf16.msra.mxu0 %v2868_v41  ;;  %2912 = vmatpush1.bf16.msra.mxu1 %v2911_v21 }
 0x5f0   :  { %v1613_v23 = vsel %vm606_vm7, %v3217_v37, %v3247_v60  ;;  %v1614_v58 = vsel %vm606_vm7, %v3218_v2, %v3248_v1  ;;  %v1617_v49 = vsel %vm606_vm7, %v3247_v60, %v3197_v35  ;;  %v1618_v38 = vsel %vm606_vm7, %v3248_v1, %v3198_v6  ;;  %2871 = vmatprep.subr.bf16.mxu0 %v2870_v11  ;;  %vm2948_vm7 = vmpackc.low %vm2025_vm6, %vm3394_vm1 }
 0x5f1   :  { %v2872_v34 = vpack.c.bf16 %v1618_v38, %v1617_v49  ;;  %v2914_v25 = vpack.c.bf16 %v1614_v58, %v1613_v23  ;;  %v4396_v32 = vpop.permute.xlu1 %3250  ;;  %v3256_v5 = vpop.permute.xlu0 %3255  ;;  %2913 = vmatprep.subr.bf16.mxu1 %v4750_v48  ;;  %v3243_v6 = vunpack.i.h.bf16 %v4362_v57  ;;  %v3242_v35 = vunpack.i.l.bf16 %v4362_v57 }
 0x5f2   :  { %v3258_v8 = vunpack.i.h.bf16 %v3256_v5  ;;  %v3257_v4 = vunpack.i.l.bf16 %v3256_v5  ;;  %vm2299_vm1 = vcmask 146432  }
 0x5f3   :  { %2873 = vmatpush1.bf16.msra.mxu0 %v2872_v34  ;;  %2915 = vmatpush1.bf16.msra.mxu1 %v2914_v25  ;;  %v1669_v51 = vsel %vm690_vm10, %v3237_v44, %v3242_v35  ;;  %v1670_v20 = vsel %vm690_vm10, %v3238_v28, %v3243_v6  ;;  %v3253_v34 = vunpack.i.h.bf16 %v4396_v32  ;;  %v3252_v25 = vunpack.i.l.bf16 %v4396_v32 }
 0x5f4   :  { %v1632_v7 = vsel %vm634_vm8, %v3223_v56, %v3258_v8  ;;  %v1631_v24 = vsel %vm634_vm8, %v3222_v10, %v3257_v4  ;;  %v1635_v2 = vsel %vm634_vm8, %v3257_v4, %v3202_v36  ;;  %v1636_v37 = vsel %vm634_vm8, %v3258_v8, %v3203_v31  ;;  %2875 = vmatprep.subr.bf16.mxu0 %v2874_v0 }
 0x5f5   :  { %v2876_v12 = vpack.c.bf16 %v1636_v37, %v1635_v2  ;;  %v2917_v61 = vpack.c.bf16 %v1632_v7, %v1631_v24  ;;  %v3261_v52 = vpop.permute.xlu1 %3260  ;;  %v4415_v62 = vpop.permute.xlu0 %3270  ;;  %2916 = vmatprep.subr.bf16.mxu1 %v4750_v48  ;;  %v2882_v60 = vpack.c.bf16 %v1670_v20, %v1669_v51  ;;  %vm2015_vm8 = vcmask 244736  }
 0x5f6   :  { %v3263_v56 = vunpack.i.h.bf16 %v3261_v52  ;;  %v3262_v10 = vunpack.i.l.bf16 %v3261_v52  ;;  %v3273_v0 = vunpack.i.h.bf16 %v4415_v62  ;;  %v3272_v14 = vunpack.i.l.bf16 %v4415_v62 }
 0x5f7   :  { %2877 = vmatpush1.bf16.msra.mxu0 %v2876_v12  ;;  %2918 = vmatpush1.bf16.msra.mxu1 %v2917_v61 }
 0x5f8   :  { %v1649_v57 = vsel %vm662_vm9, %v3227_v13, %v3262_v10  ;;  %v1650_v63 = vsel %vm662_vm9, %v3228_v9, %v3263_v56  ;;  %v1653_v39 = vsel %vm662_vm9, %v3262_v10, %v3207_v3  ;;  %v1654_v31 = vsel %vm662_vm9, %v3263_v56, %v3208_v27  ;;  %2879 = vmatprep.subr.bf16.mxu0 %v2878_v15 }
 0x5f9   :  { %v2880_v36 = vpack.c.bf16 %v1654_v31, %v1653_v39  ;;  %v2920_v41 = vpack.c.bf16 %v1650_v63, %v1649_v57  ;;  %v3266_v21 = vpop.permute.xlu1 %3265  ;;  %v3276_v50 = vpop.permute.xlu0 %3275  ;;  %2919 = vmatprep.subr.bf16.mxu1 %v4750_v48 }
 0x5fa   :  { %v3278_v18 = vunpack.i.h.bf16 %v3276_v50  ;;  %v3277_v1 = vunpack.i.l.bf16 %v3276_v50  ;;  %v3267_v38 = vunpack.i.l.bf16 %v3266_v21  ;;  %v3268_v27 = vunpack.i.h.bf16 %v3266_v21 }
 0x5fb   :  { %2881 = vmatpush1.bf16.msra.mxu0 %v2880_v36  ;;  %2921 = vmatpush1.bf16.msra.mxu1 %v2920_v41 }
 0x5fc   :  { %v1668_v11 = vsel %vm690_vm10, %v3243_v6, %v3278_v18  ;;  %v1667_v9 = vsel %vm690_vm10, %v3242_v35, %v3277_v1  ;;  %2883 = vmatprep.subr.bf16.mxu0 %v2882_v60  ;;  %v1671_v13 = vsel %vm690_vm10, %v3277_v1, %v3237_v44  ;;  %v1672_v29 = vsel %vm690_vm10, %v3278_v18, %v3238_v28 }
 0x5fd   :  { %v2923_v40 = vpack.c.bf16 %v1668_v11, %v1667_v9  ;;  %v4439_v23 = vpop.permute.xlu1 %3285  ;;  %v3281_v58 = vpop.permute.xlu0 %3280  ;;  %2922 = vmatprep.subr.bf16.mxu1 %v4750_v48  ;;  %v2884_v49 = vpack.c.bf16 %v1672_v29, %v1671_v13  ;;  %v1687_v7 = vsel %vm718_vm11, %v3267_v38, %v3252_v25  ;;  %v1688_v43 = vsel %vm718_vm11, %v3268_v27, %v3253_v34 }
 0x5fe   :  { %v3283_v3 = vunpack.i.h.bf16 %v3281_v58  ;;  %v3282_v5 = vunpack.i.l.bf16 %v3281_v58  ;;  %v2892_v62 = vpack.c.bf16 %v1688_v43, %v1687_v7  ;;  %v3288_v56 = vunpack.i.h.bf16 %v4439_v23 }
 0x5ff   :  { %2924 = vmatpush1.bf16.msra.mxu1 %v2923_v40  ;;  %2885 = vmatpush1.bf16.msra.mxu0 %v2884_v49  ;;  %v3287_v10 = vunpack.i.l.bf16 %v4439_v23 }
 0x600   :  { %2925 = vmatprep.subr.bf16.mxu1 %v4750_v48  ;;  %2887 = vmatprep.subr.bf16.mxu0 %v2886_v22  ;;  %v1706_v59 = vsel %vm746_vm12, %v3283_v3, %v3273_v0  ;;  %v1705_v32 = vsel %vm746_vm12, %v3282_v5, %v3272_v14 }
 0x601   :  { %v3296_v8 = vpop.permute.xlu1 %3295  ;;  %v3291_v4 = vpop.permute.xlu0 %3290  ;;  %v2896_v15 = vpack.c.bf16 %v1706_v59, %v1705_v32 }
 0x602   :  { %v3298_v28 = vunpack.i.h.bf16 %v3296_v8  ;;  %v3297_v44 = vunpack.i.l.bf16 %v3296_v8  ;;  %v3293_v33 = vunpack.i.h.bf16 %v3291_v4  ;;  %v3292_v24 = vunpack.i.l.bf16 %v3291_v4 }
 0x603   :  { %2927 = vmatpush1.bf16.msra.mxu1 %v2926_v26  ;;  %2889 = vmatpush1.bf16.msra.mxu0 %v2888_v54 }
 0x604   :  { %v1690_v22 = vsel %vm718_vm11, %v3293_v33, %v3268_v27  ;;  %2928 = vmatprep.subr.bf16.mxu1 %v4750_v48  ;;  %v1689_v46 = vsel %vm718_vm11, %v3292_v24, %v3267_v38  ;;  %v1685_v2 = vsel %vm718_vm11, %v3252_v25, %v3292_v24  ;;  %v1686_v37 = vsel %vm718_vm11, %v3253_v34, %v3293_v33 }
 0x605   :  { %v3301_v16 = vpop.permute.xlu1 %3300  ;;  %v3306_v26 = vpop.permute.xlu0 %3305  ;;  %v1707_v17 = vsel %vm746_vm12, %v3297_v44, %v3282_v5  ;;  %v1708_v47 = vsel %vm746_vm12, %v3298_v28, %v3283_v3  ;;  %v2929_v54 = vpack.c.bf16 %v1690_v22, %v1689_v46  ;;  %v2890_v12 = vpack.c.bf16 %v1686_v37, %v1685_v2 }
 0x606   :  { %v3303_v6 = vunpack.i.h.bf16 %v3301_v16  ;;  %v3302_v35 = vunpack.i.l.bf16 %v3301_v16  ;;  %v1703_v61 = vsel %vm746_vm12, %v3272_v14, %v3297_v44  ;;  %v1704_v52 = vsel %vm746_vm12, %v3273_v0, %v3298_v28 }
 0x607   :  { %2930 = vmatpush1.bf16.msra.mxu1 %v2929_v54  ;;  %v2932_v51 = vpack.c.bf16 %v1708_v47, %v1707_v17  ;;  %2891 = vmatprep.subr.bf16.mxu0 %v2890_v12  ;;  %v2894_v63 = vpack.c.bf16 %v1704_v52, %v1703_v61  ;;  %v3308_v18 = vunpack.i.h.bf16 %v3306_v26  ;;  %v3307_v1 = vunpack.i.l.bf16 %v3306_v26  ;;  %v1766_v12 = vld [vmem:[%s4712_s12 + $0x18] sm:$0xff]  ;;  %v1765_v61 = vld [vmem:[%s4712_s12 + $0x10] sm:$0xff]  ;;  %v1768_v52 = vld [vmem:[%s4712_s12 + $0x28] sm:$0xff] }
 0x608   :  { %2931 = vmatprep.subr.bf16.mxu1 %v4750_v48  ;;  %2893 = vmatpush1.bf16.msra.mxu0 %v2892_v62  ;;  %v1723_v21 = vsel %vm774_vm13, %v3302_v35, %v3287_v10  ;;  %v1724_v50 = vsel %vm774_vm13, %v3303_v6, %v3288_v56  ;;  %v1767_v62 = vld [vmem:[%s4712_s12 + $0x20] sm:$0xff] }
 0x609   :  { %v3321_v20 = vpop.permute.xlu1 %3320  ;;  %v3311_v57 = vpop.permute.xlu0 %3310  ;;  %2895 = vmatprep.subr.bf16.mxu0 %v2894_v63  ;;  %v2900_v34 = vpack.c.bf16 %v1724_v50, %v1723_v21 }
 0x60a   :  { %v3323_v39 = vunpack.i.h.bf16 %v3321_v20  ;;  %v3322_v31 = vunpack.i.l.bf16 %v3321_v20  ;;  %v3313_v36 = vunpack.i.h.bf16 %v3311_v57  ;;  %v3312_v41 = vunpack.i.l.bf16 %v3311_v57 }
 0x60b   :  { %2933 = vmatpush1.bf16.msra.mxu1 %v2932_v51 }
 0x60c   :  { %v1726_v60 = vsel %vm774_vm13, %v3313_v36, %v3303_v6  ;;  %v1725_v11 = vsel %vm774_vm13, %v3312_v41, %v3302_v35  ;;  %v1721_v9 = vsel %vm774_vm13, %v3287_v10, %v3312_v41  ;;  %v1722_v13 = vsel %vm774_vm13, %v3288_v56, %v3313_v36  ;;  %2934 = vmatprep.subr.bf16.mxu1 %v4750_v48  ;;  %v1763_v35 = vld [vmem:[%s4712_s12] sm:$0xff]  ;;  %v1770_v56 = vld [vmem:[%s4712_s12 + $0x38] sm:$0x3f]  ;;  %v1769_v10 = vld [vmem:[%s4712_s12 + $0x30] sm:$0x3f] }
 0x60d   :  { %v2935_v29 = vpack.c.bf16 %v1726_v60, %v1725_v11  ;;  %v3326_v40 = vpop.permute.xlu1 %3325  ;;  %v3316_v23 = vpop.permute.xlu0 %3315  ;;  %v2898_v58 = vpack.c.bf16 %v1722_v13, %v1721_v9  ;;  %2897 = vmatpush1.bf16.msra.mxu0 %v2896_v15  ;;  %v1739_v27 = vsel %vm802_vm14, %v3307_v1, %v3322_v31  ;;  %v1740_v3 = vsel %vm802_vm14, %v3308_v18, %v3323_v39 }
 0x60e   :  { %v3318_v49 = vunpack.i.h.bf16 %v3316_v23  ;;  %v3317_v38 = vunpack.i.l.bf16 %v3316_v23  ;;  %v3328_v25 = vunpack.i.h.bf16 %v3326_v40  ;;  %v3327_v28 = vunpack.i.l.bf16 %v3326_v40 }
 0x60f   :  { %2899 = vmatprep.subr.bf16.mxu0 %v2898_v58  ;;  %2936 = vmatpush1.bf16.msra.mxu1 %v2935_v29  ;;  %v2902_v24 = vpack.c.bf16 %v1740_v3, %v1739_v27 }
 0x610   :  { %v1744_v5 = vsel %vm802_vm14, %v3323_v39, %v3318_v49  ;;  %v1741_v8 = vsel %vm802_vm14, %v3317_v38, %v3307_v1  ;;  %v1742_v4 = vsel %vm802_vm14, %v3318_v49, %v3308_v18  ;;  %v1743_v0 = vsel %vm802_vm14, %v3322_v31, %v3317_v38  ;;  %2937 = vmatprep.subr.bf16.mxu1 %v4750_v48 }
 0x611   :  { %v2904_v44 = vpack.c.bf16 %v1742_v4, %v1741_v8  ;;  %v2938_v33 = vpack.c.bf16 %v1744_v5, %v1743_v0  ;;  %v3336_v14 = vpop.permute.xlu1 %3335  ;;  %v3331_v7 = vpop.permute.xlu0 %3330  ;;  %2901 = vmatpush1.bf16.msra.mxu0 %v2900_v34 }
 0x612   :  { %v3338_v43 = vunpack.i.h.bf16 %v3336_v14  ;;  %v3337_v59 = vunpack.i.l.bf16 %v3336_v14  ;;  %v3333_v22 = vunpack.i.h.bf16 %v3331_v7  ;;  %v3332_v32 = vunpack.i.l.bf16 %v3331_v7  ;;  %2903 = vmatprep.subr.bf16.mxu0 %v2902_v24 }
 0x613   :  { %2939 = vmatpush1.bf16.msra.mxu1 %v2938_v33 }
 0x614   :  { %v1759_v46 = vsel %vm830_vm15, %v3337_v59, %v3327_v28  ;;  %v1760_v16 = vsel %vm830_vm15, %v3338_v43, %v3328_v25  ;;  %v1762_v26 = vsel %vm830_vm15, %v3333_v22, %v3338_v43  ;;  %v1761_v2 = vsel %vm830_vm15, %v3332_v32, %v3337_v59  ;;  %2940 = vmatprep.subr.bf16.mxu1 %v4750_v48 }
 0x615   :  { %v2941_v37 = vpack.c.bf16 %v1762_v26, %v1761_v2  ;;  %v1757_v17 = vsel %vm830_vm15, %v3327_v28, %v3332_v32  ;;  %v1758_v47 = vsel %vm830_vm15, %v3328_v25, %v3333_v22  ;;  %v2908_v54 = vpack.c.bf16 %v1760_v16, %v1759_v46  ;;  %2905 = vmatpush1.bf16.msra.mxu0 %v2904_v44 }
 0x616   :  { %v2906_v6 = vpack.c.bf16 %v1758_v47, %v1757_v17 }
 0x617   :  { %2942 = vmatpush1.bf16.msra.mxu1 %v2941_v37 }
 0x618   :  { %2907 = vmatprep.subr.bf16.mxu0 %v2906_v6  ;;  %2953 = vmatprep.subr.bf16.mxu1 %v4750_v48  ;;  %v1994_v6 = vld [vmem:[%s4714_s14] sm:$0xff] }
 0x619   :  { %2909 = vmatpush1.bf16.msra.mxu0 %v2908_v54 }
 0x61a   :  { %1962 = vmatmul.mubr.f32.vlgmr.msra.gmra.mrb[40].mxu1 %v1763_v35 }
 0x61b   :  { %2543 = vmatprep.mubr.msk.f32.mxu1 %vm1795_vm5, %v1766_v12 }
 0x61c   :  { %1873 = vmatmul.mubr.f32.vlgmr.msra.gmra.mrb[20].mxu0 %v1763_v35 }
 0x61d   :  { %2539 = vmatprep.mubr.msk.f32.mxu0 %vm1795_vm5, %v1766_v12  ;;  %v1995_v12 = vld [vmem:[%s4714_s14 + $0x8] sm:$0xff] }
 0x61e   :  { %1967 = vmatmul.mubr.f32.gmra.mrb[42].mxu1 %v1765_v61 }
 0x61f   :  { %2544 = vmatprep.mubr.msk.f32.mxu1 %vm1795_vm5, %v1768_v52 }
 0x620   :  { %1879 = vmatmul.mubr.f32.gmra.mrb[22].mxu0 %v1765_v61 }
 0x621   :  { %2540 = vmatprep.mubr.msk.f32.mxu0 %vm1795_vm5, %v1768_v52 }
 0x622   :  { %1972 = vmatmul.mubr.f32.gmra.mrb[44].mxu1 %v1767_v62  ;;  %v1778_v20 = vpop.permute.xlu0 %1777  ;;  %v1783_v31 = vpop.permute.xlu1 %1782 }
 0x623   :  { %2545 = vmatprep.mubr.msk.f32.mxu1 %vm1795_vm5, %v1770_v56 }
 0x624   :  { %1885 = vmatmul.mubr.f32.gmra.mrb[24].mxu0 %v1767_v62 }
 0x625   :  { %2541 = vmatprep.mubr.msk.f32.mxu0 %vm1795_vm5, %v1770_v56 }
 0x626   :  { %1977 = vmatmul.mubr.f32.gmra.mrb[46].mxu1 %v1769_v10  ;;  %v1788_v27 = vpop.permute.xlu0 %1787  ;;  %v1793_v0 = vpop.permute.xlu1 %1792 }
 0x627   :  { %2710 = vmatprep.mubr.msk.f32.mxu1 %vm3395_vm3, %v4749_v19 }
 0x628   :  { %1891 = vmatmul.mubr.f32.gmra.mrb[26].mxu0 %v1769_v10 }
 0x629   :  { %2099 = vmatprep.mubr.f32.mxu0 %v4749_v19 }
 0x62a   :  { %v2003_v61 = vpop.permute.xlu0 %2002  ;;  %v2008_v10 = vpop.permute.xlu1 %2007 }
 0x6ed   :  { %v1963_v15 = vpop.f32.mrb[40].mxu1 }
 0x6ee   :  { %v1965_v51 = vpop.f32.mrb[41].mxu1  ;;  %v1964_v63 = vadd.f32 %v1963_v15, %v1778_v20 }
 0x6ef   :  { %v1874_v57 = vpop.f32.mrb[20].mxu0 }
 0x6f0   :  { %v1876_v39 = vpop.f32.mrb[21].mxu0  ;;  %v1875_v41 = vadd.f32 %v1874_v57, %v1778_v20  ;;  %v1984_v60 = vmax.f32 %v1964_v63, 0.0 }
 0x6f1   :  { %v1968_v36 = vpop.f32.mrb[42].mxu1  ;;  %v1877_v18 = vadd.f32 %v1876_v39, %v1778_v20 }
 0x6f2   :  { %v1969_v21 = vadd.f32 %v1968_v36, %v1783_v31  ;;  %v1970_v50 = vpop.f32.mrb[43].mxu1  ;;  %v1982_v23 = vmax.f32 %v1875_v41, 0.0 }
 0x6f3   :  { %v1880_v1 = vpop.f32.mrb[22].mxu0  ;;  %v1983_v3 = vmax.f32 %v1877_v18, 0.0 }
 0x6f4   :  { %v1987_v11 = vmax.f32 %v1969_v21, 0.0  ;;  %v1881_v9 = vadd.f32 %v1880_v1, %v1783_v31  ;;  %v1882_v13 = vpop.f32.mrb[23].mxu0 }
 0x6f5   :  { %v1883_v29 = vadd.f32 %v1882_v13, %v1783_v31  ;;  %v1973_v40 = vpop.f32.mrb[44].mxu1 }
 0x6f6   :  { %v2954_v58 = vpack.c.bf16 %v1987_v11, %v1984_v60  ;;  %v1985_v49 = vmax.f32 %v1881_v9, 0.0  ;;  %v1975_v38 = vpop.f32.mrb[45].mxu1  ;;  %v1974_v8 = vadd.f32 %v1973_v40, %v1788_v27 }
 0x6f7   :  { %v1986_v34 = vmax.f32 %v1883_v29, 0.0  ;;  %v1886_v25 = vpop.f32.mrb[24].mxu0  ;;  %v2013_v38 = vpop.permute.xlu0 %2012 }
 0x6f8   :  { %v2945_v5 = vpack.c.bf16 %v1985_v49, %v1982_v23  ;;  %v1888_v4 = vpop.f32.mrb[25].mxu0  ;;  %2955 = vmatpush3.bf16.msra.mxu1 %v2954_v58  ;;  %v1887_v33 = vadd.f32 %v1886_v25, %v1788_v27  ;;  %v1990_v59 = vmax.f32 %v1974_v8, 0.0 }
 0x6f9   :  { %v2943_v28 = vpack.c.bf16 %v1986_v34, %v1983_v3  ;;  %v1978_v44 = vpop.f32.mrb[46].mxu1  ;;  %2956 = vmatprep.subr.bf16.mxu1 %v4750_v48  ;;  %v1889_v24 = vadd.f32 %v1888_v4, %v1788_v27 }
 0x6fa   :  { %v1979_v14 = vadd.f32 %v1978_v44, %v1793_v0  ;;  %v1980_v7 = vpop.f32.mrb[47].mxu1  ;;  %v1988_v26 = vmax.f32 %v1887_v33, 0.0 }
 0x6fb   :  { %v1892_v43 = vpop.f32.mrb[26].mxu0  ;;  %2944 = vmatprep.subr.bf16.mxu0 %v2943_v28  ;;  %v1989_v17 = vmax.f32 %v1889_v24, 0.0 }
 0x6fc   :  { %v1993_v22 = vmax.f32 %v1979_v14, 0.0  ;;  %v1893_v32 = vadd.f32 %v1892_v43, %v1793_v0  ;;  %v1894_v46 = vpop.f32.mrb[27].mxu0  ;;  %2946 = vmatpush1.bf16.msra.mxu0 %v2945_v5 }
 0x6fd   :  { %v1895_v16 = vadd.f32 %v1894_v46, %v1793_v0 }
 0x6fe   :  { %v2957_v2 = vpack.c.bf16 %v1993_v22, %v1990_v59  ;;  %v1991_v37 = vmax.f32 %v1893_v32, 0.0 }
 0x6ff   :  { %v1992_v47 = vmax.f32 %v1895_v16, 0.0 }
 0x700   :  { %v2950_v54 = vpack.c.bf16 %v1991_v37, %v1988_v26  ;;  %2959 = vmatpush3.bf16.msk.msra.mxu1 %vm2948_vm7, %v2957_v2 }
 0x701   :  { %v2947_v35 = vpack.c.bf16 %v1992_v47, %v1989_v17  ;;  %2964 = vmatprep.subr.bf16.mxu1 %v4750_v48  ;;  %v1996_v48 = vld [vmem:[%s4714_s14 + $0x10] sm:$0x3] }
 0x703   :  { %2949 = vmatprep.subr.msk.bf16.mxu0 %vm2948_vm7, %v2947_v35  ;;  %2711 = vmatmul.mubr.msk.f32.vlgmr.msra.gmra.mrb[48].mxu1 %vm2015_vm8, %v1994_v6 }
 0x704   :  { %2952 = vmatpush1.bf16.msk.msra.mxu0 %vm2948_vm7, %v2950_v54  ;;  %2713 = vmatprep.mubr.msk.f32.mxu1 %vm3395_vm3, %v4749_v19 }
 0x707   :  { %2548 = vmatmul.mubr.msk.f32.vlgmr.msra.gmra.mrb[28].mxu0 %vm2015_vm8, %v1994_v6  ;;  %2714 = vmatmul.mubr.msk.f32.gmra.mrb[50].mxu1 %vm2015_vm8, %v1995_v12 }
 0x708   :  { %2105 = vmatprep.mubr.f32.mxu0 %v4749_v19  ;;  %2716 = vmatprep.mubr.msk.f32.mxu1 %vm3395_vm3, %v4749_v19 }
 0x70b   :  { %2549 = vmatmul.mubr.msk.f32.gmra.mrb[30].mxu0 %vm2015_vm8, %v1995_v12  ;;  %2717 = vmatmul.mubr.msk.f32.gmra.mrb[52].mxu1 %vm2015_vm8, %v1996_v48 }
 0x70c   :  { %2111 = vmatprep.mubr.f32.mxu0 %v4749_v19  ;;  %2725 = vmatprep.mubr.msk.f32.mxu1 %vm3395_vm3, %v4749_v19 }
 0x70f   :  { %2550 = vmatmul.mubr.msk.f32.gmra.mrb[32].mxu0 %vm2015_vm8, %v1996_v48 }
 0x710   :  { %2376 = vmatprep.mubr.f32.mxu0 %v4749_v19 }
 0x7d6   :  { %v2184_v52 = vpop.f32.mrb[48].mxu1 }
 0x7d7   :  { %v2185_v62 = vadd.f32 %v2184_v52, %v2003_v61  ;;  %v2712_v56 = vpop.f32.mrb[49].mxu1 }
 0x7d9   :  { %v2200_v15 = vmax.f32 %v2185_v62, 0.0 }
 0x7da   :  { %v2101_v51 = vpop.f32.mrb[28].mxu0  ;;  %v2189_v20 = vpop.f32.mrb[50].mxu1 }
 0x7db   :  { %v2102_v57 = vadd.f32 %v2101_v51, %v2003_v61  ;;  %v2103_v63 = vpop.f32.mrb[29].mxu0  ;;  %v2190_v39 = vadd.f32 %v2189_v20, %v2008_v10  ;;  %v2715_v31 = vpop.f32.mrb[51].mxu1  ;;  %v4582_v41 = vmul.f32 %v2200_v15, %v3638_v45 }
 0x7dc   :  { %v2104_v1 = vadd.f32 %v2103_v63, %v2003_v61 }
 0x7dd   :  { %v2203_v36 = vmax.f32 %v2190_v39, 0.0  ;;  %v2198_v18 = vmax.f32 %v2102_v57, 0.0 }
 0x7de   :  { %v2107_v21 = vpop.f32.mrb[30].mxu0  ;;  %v2194_v50 = vpop.f32.mrb[52].mxu1  ;;  %v2199_v3 = vmax.f32 %v2104_v1, 0.0 }
 0x7df   :  { %v4585_v60 = vmul.f32 %v2203_v36, %v3638_v45  ;;  %v2108_v11 = vadd.f32 %v2107_v21, %v2008_v10  ;;  %v2109_v9 = vpop.f32.mrb[31].mxu0  ;;  %v2718_v13 = vpop.f32.mrb[53].mxu1  ;;  %v4590_v27 = vmul.f32 %v2198_v18, %v3642_v53  ;;  %v2195_v5 = vadd.f32 %v2194_v50, %v2013_v38 }
 0x7e0   :  { %v2110_v29 = vadd.f32 %v2109_v9, %v2008_v10  ;;  %v4602_v0 = vmul.f32 %v2199_v3, %v3644_v55 }
 0x7e1   :  { %v2201_v40 = vmax.f32 %v2108_v11, 0.0  ;;  %v3339_v23 = vpack.i.bf16 %v4585_v60, %v4582_v41  ;;  %v2206_v28 = vmax.f32 %v2195_v5, 0.0 }
 0x7e2   :  { %v2202_v58 = vmax.f32 %v2110_v29, 0.0  ;;  %v2113_v49 = vpop.f32.mrb[32].mxu0 }
 0x7e3   :  { %v4593_v34 = vmul.f32 %v2201_v40, %v3642_v53  ;;  %v2115_v25 = vpop.f32.mrb[33].mxu0  ;;  %3340 = vrot.lane.b32.xlu1 %v3339_v23, %s3402_s0  ;;  %v2114_v44 = vadd.f32 %v2113_v49, %v2013_v38  ;;  %v4611_v7 = vmul.f32 %v2206_v28, %v3638_v45  ;;  %v2289_v45 = vld [vmem:[#allocation2] sm:$0x1] }
 0x7e4   :  { %v4597_v8 = vmul.f32 %v2202_v58, %v3644_v55  ;;  %v2116_v33 = vadd.f32 %v2115_v25, %v2013_v38 }
 0x7e5   :  { %v3354_v4 = vpack.i.bf16 %v4593_v34, %v4590_v27  ;;  %v2204_v24 = vmax.f32 %v2114_v44, 0.0 }
 0x7e6   :  { %v3359_v14 = vpack.i.bf16 %v4597_v8, %v4602_v0  ;;  %v2205_v43 = vmax.f32 %v2116_v33, 0.0 }
 0x7e7   :  { %3355 = vrot.lane.b32.xlu0 %v3354_v4, %s3403_s19  ;;  %3345 = vrot.lane.b32.xlu1 %v3339_v23, %s3403_s19  ;;  %v4617_v59 = vmul.f32 %v2204_v24, %v3642_v53 }
 0x7e8   :  { %v4620_v22 = vmul.f32 %v2205_v43, %v3644_v55 }
 0x7eb   :  { %3360 = vrot.lane.b32.xlu0 %v3359_v14, %s3402_s0  ;;  %3350 = vrot.lane.b32.xlu1 %v3354_v4, %s3402_s0 }
 0x7ef   :  { %3365 = vrot.lane.b32.xlu0 %v3359_v14, %s3403_s19  ;;  %2232 = vrot.lane.b32.xlu1 %v4611_v7, %s3402_s0 }
 0x7f3   :  { %2226 = vrot.lane.b32.xlu0 %v4620_v22, %s3402_s0  ;;  %2220 = vrot.lane.b32.xlu1 %v4617_v59, %s3402_s0 }
 0x7f7   :  { %2262 = vrot.lane.b32.xlu0 %v4620_v22, %s3403_s19  ;;  %2268 = vrot.lane.b32.xlu1 %v4611_v7, %s3403_s19 }
 0x7fb   :  { %2256 = vrot.lane.b32.xlu0 %v4617_v59, %s3403_s19  ;;  %2292 = vperm.xlu1 %2993, %v2289_v45  }
 0x855   :  { %v3341_v53 = vpop.permute.xlu1 %3340 }
 0x856   :  { %v3343_v37 = vunpack.i.h.bf16 %v3341_v53  ;;  %v3342_v17 = vunpack.i.l.bf16 %v3341_v53 }
 0x859   :  { %v3356_v55 = vpop.permute.xlu0 %3355  ;;  %v3346_v32 = vpop.permute.xlu1 %3345 }
 0x85a   :  { %v3358_v46 = vunpack.i.h.bf16 %v3356_v55  ;;  %v3357_v16 = vunpack.i.l.bf16 %v3356_v55  ;;  %v3348_v26 = vunpack.i.h.bf16 %v3346_v32  ;;  %v3347_v2 = vunpack.i.l.bf16 %v3346_v32 }
 0x85c   :  { %v2276_v61 = vsel %vm718_vm11, %v3347_v2, %v3357_v16  ;;  %v2277_v52 = vsel %vm718_vm11, %v3348_v26, %v3358_v46 }
 0x85d   :  { %v3361_v47 = vpop.permute.xlu0 %3360  ;;  %v3351_v54 = vpop.permute.xlu1 %3350 }
 0x85e   :  { %v3363_v6 = vunpack.i.h.bf16 %v3361_v47  ;;  %v3362_v35 = vunpack.i.l.bf16 %v3361_v47  ;;  %v3353_v12 = vunpack.i.h.bf16 %v3351_v54  ;;  %v3352_v48 = vunpack.i.l.bf16 %v3351_v54 }
 0x860   :  { %v2235_v62 = vsel %vm690_vm10, %v3363_v6, %v3343_v37  ;;  %v2234_v56 = vsel %vm690_vm10, %v3362_v35, %v3342_v17  ;;  %v2238_v10 = vsel %vm690_vm10, %v3353_v12, %v3363_v6  ;;  %v2241_v15 = vsel %vm690_vm10, %v3343_v37, %v3353_v12 }
 0x861   :  { %v2248_v51 = vmax.f32 %v2235_v62, %v4585_v60  ;;  %v2245_v20 = vmax.f32 %v2234_v56, %v4582_v41  ;;  %v2246_v57 = vmax.f32 %v2241_v15, %v4593_v34  ;;  %v2247_v63 = vmax.f32 %v2238_v10, %v4597_v8  ;;  %v3366_v39 = vpop.permute.xlu0 %3365  ;;  %v2233_v31 = vpop.permute.xlu1 %2232 }
 0x862   :  { %v2237_v36 = vsel %vm690_vm10, %v3352_v48, %v3362_v35  ;;  %v2240_v21 = vsel %vm690_vm10, %v3342_v17, %v3352_v48  ;;  %v3368_v50 = vunpack.i.h.bf16 %v3366_v39  ;;  %v3367_v18 = vunpack.i.l.bf16 %v3366_v39 }
 0x863   :  { %v2281_v1 = vmax.f32 %v2245_v20, %v2276_v61  ;;  %v2284_v11 = vmax.f32 %v2248_v51, %v2277_v52  ;;  %v2243_v60 = vmax.f32 %v2240_v21, %v4590_v27  ;;  %v2244_v41 = vmax.f32 %v2237_v36, %v4602_v0 }
 0x864   :  { %v2271_v9 = vsel %vm718_vm11, %v3368_v50, %v3348_v26  ;;  %v2270_v13 = vsel %vm718_vm11, %v3367_v18, %v3347_v2  ;;  %v2273_v29 = vsel %vm718_vm11, %v3357_v16, %v3367_v18  ;;  %v2274_v40 = vsel %vm718_vm11, %v3358_v46, %v3368_v50  ;;  %v2288_v46 = vld [vmem:[%s4716_s16] sm:$0x1]  ;;  %s3409_s16 = smov [#allocation3]  }
 0x865   :  { %v2279_v23 = vmax.f32 %v2243_v60, %v2273_v29  ;;  %v2282_v58 = vmax.f32 %v2246_v57, %v2274_v40  ;;  %v2227_v49 = vpop.permute.xlu0 %2226  ;;  %v2221_v38 = vpop.permute.xlu1 %2220  ;;  %v2965_v3 = vpack.c.bf16 %v2284_v11, %v2281_v1  ;;  %v2280_v27 = vmax.f32 %v2244_v41, %v2270_v13  ;;  %s2491_s19 = sshll.u32 %s3409_s16, 4  ;;  %s2492_s19 = int_to_ptr.vmem [resolvable:$true] %s2491_s19 }
 0x866   :  { %v2239_v34 = vsel %vm690_vm10, %v2221_v38, %v2227_v49  ;;  %v2283_v25 = vmax.f32 %v2247_v63, %v2271_v9  ;;  %v2236_v44 = vsel %vm690_vm10, %v2227_v49, %v2233_v31  ;;  %v2242_v33 = vsel %vm690_vm10, %v2233_v31, %v2221_v38  ;;  %s3369_s28 = scalar_lea.vmem %s2492_s19, 48  ;;  %s3373_s22 = scalar_lea.vmem %s2492_s19, 64 }
 0x867   :  { %2966 = vmatpush3.bf16.msra.mxu1 %v2965_v3  ;;  %v2962_v5 = vpack.c.bf16 %v2282_v58, %v2279_v23  ;;  %v2250_v4 = vmax.f32 %v2239_v34, %v4620_v22  ;;  %v2251_v43 = vmax.f32 %v2236_v44, %v4611_v7  ;;  %v3408_v7 = vmov 1966171168   ;;  %p3370_p0 = scmp.ne.s32.totalorder %s2492_s19, %s3369_s28  ;;  %p3374_p1 = scmp.lt.s32.totalorder %s2492_s19, %s2492_s19 }
 0x868   :  { %v2960_v8 = vpack.c.bf16 %v2283_v25, %v2280_v27  ;;  %2723 = vmatprep.subr.mxu1 %v4749_v19  ;;  %v2249_v19 = vmax.f32 %v2242_v33, %v4617_v59  ;;  %v2458_v59 = vunpack.c.l.s4 %v3408_v7  ;;  %v4753_v10 = vlaneseq  ;;  %p3375_p2 = scmp.lt.s32.totalorder %s3373_s22, %s3369_s28 }
 0x869   :  { %v2263_v0 = vpop.permute.xlu0 %2262  ;;  %v2269_v28 = vpop.permute.xlu1 %2268 }
 0x86a   :  { %2961 = vmatprep.subr.bf16.mxu0 %v2960_v8  ;;  %v2272_v14 = vsel %vm718_vm11, %v2263_v0, %v2269_v28  ;;  %v2459_v26 = vunpack.c.0.s8 %v2458_v59  ;;  %vm2482_vm3 = vcmp.lt.s32.totalorder %v4753_v10, 384  ;;  %p3376_p3 = por %p3375_p2, %p3374_p1 }
 0x86b   :  { %v2286_v24 = vmax.f32 %v2250_v4, %v2272_v14  ;;  %2963 = vmatpush1.bf16.msra.mxu0 %v2962_v5 }
 0x86c   :  { %v2462_v12 = vsub.s32 %v2459_v26, %v3630_v30  ;;  %p3377_p4 = pnand %p3376_p3, %p3370_p0 }
 0x86d   :  { %v2257_v45 = vpop.permute.xlu0 %2256  ;;  %2555 = vmatprep.subr.msk.mxu0 %vm1206_vm2, %v2286_v24 }
 0x86e   :  { %v2275_v22 = vsel %vm718_vm11, %v2257_v45, %v2263_v0  ;;  %v2278_v53 = vsel %vm718_vm11, %v2269_v28, %v2257_v45 }
 0x86f   :  { %v2285_v55 = vmax.f32 %v2249_v19, %v2275_v22  ;;  %v2287_v32 = vmax.f32 %v2251_v43, %v2278_v53 }
 0x871   :  { %2556 = vmatpush1.msk.msra.mxu0 %vm1206_vm2, %v2285_v55  ;;  %2724 = vmatpush3.msk.msra.mxu1 %vm1206_vm2, %v2287_v32 }
 0x872   :  { %2557 = vmatmul.mubr.msk.f32.vlgmr.msra.gmra.mrb[34].mxu0 %vm2299_vm1, %v2288_v46  ;;  %2726 = vmatmul.mubr.msk.f32.vlgmr.msra.gmra.mrb[54].mxu1 %vm2299_vm1, %v2288_v46 }
 0x87a   :  { %v2293_v16 = vpop.permute.xlu1 %2292 }
 0x87b   :  { %v2298_v2 = vrot.slane %v2293_v16, %v4752_v42 }
 0x945   :  { %v2378_v37 = vpop.f32.mrb[34].mxu0  ;;  %v2449_v17 = vpop.f32.mrb[54].mxu1 }
 0x946   :  { %v2379_v47 = vadd.f32 %v2378_v37, %v2298_v2  ;;  %v2380_v54 = vpop.f32.mrb[35].mxu0  ;;  %v2727_v6 = vpop.f32.mrb[55].mxu1  ;;  %v2450_v35 = vadd.f32 %v2449_v17, %v2298_v2 }
 0x947   :  { %v2381_v48 = vadd.f32 %v2380_v54, %v2298_v2 }
 0x948   :  { %v2470_v52 = vrot.slane %v2450_v35, %v2462_v12 }
 0x949   :  { %v2456_v61 = vcombine.low %v2379_v47, %v2381_v48 }
 0x94b   :  { %v2463_v62 = vrot.slane %v2456_v61, %v2462_v12 }
 0x94d   :  { %v2471_v56 = vcombine.low %v2463_v62, %v2470_v52 }
 0x94f   :  { %v2478_v15 = vrot.slane %v2471_v56, %v2462_v12 }
 0x951   :  { %2484 = vst.msk [vmem:[#allocation3] sm:$0x7] %vm2482_vm3, %v2478_v15 }
 0x952   :  { %3380 = shalt.err (!%p3377_p4)
}
 0x953   :  { %s3381_s7 = scalar_lea.hbm %s4718_s18, 48 }
 0x954   :  { %p3382_p5 = scmp.ne.s32.totalorder %s4718_s18, %s3381_s7  ;;  %p3385_p6 = scmp.lt.u32.totalorder %s3381_s7, %s4718_s18 }
 0x956   :  { %p3387_p7 = pnand %p3385_p6, %p3382_p5 }
 0x958   :  { %3390 = shalt.err (!%p3387_p7)
}
 0x959   :  { %2494 = dma.vmem_to_hbm [thread:$0]  %s2492_s19, 48, %s4718_s18, [#allocation4]  }
 0x95a   :  { %3391 = dma.done.wait [#allocation4], 48  }
 0x95b   :  { %3392 = vsyncadd [#allocation4], 4294967248 }
 0x95c   :  { %2498 = vsyncpa [#allocation4], 1 }

</bundles_post_ra>
